<compile_context>
chip_gen: v6e
topology: v6e:2x2x1
jax: 0.10.0
libtpu: 0.0.40
codegen_flags: <defaults>
</compile_context>

<pallas_src>
import functools

import jax
import jax.numpy as jnp
from jax.experimental import pallas as pl
from jax.experimental.pallas import tpu as pltpu

UNITS = 300          # hidden width of the PyTorch model
UNITS_PAD = 384      # padded to a multiple of 128 for lane alignment


def _mlp_kernel(x_ref, w1_ref, b1_ref, wh_ref, bh_ref, w7_ref, b7_ref, o_ref):
    """One batch tile of the 7-layer MLP, fully VMEM-resident."""
    # Layer 1 (fan_in == 1): outer product on the VPU (keeps the MXU free).
    #   (tm, 1) * (1, 384) + (1, 384) -> (tm, 384) f32
    h = jnp.maximum(x_ref[...] * w1_ref[...] + b1_ref[...], 0.0)
    hb = h.astype(jnp.bfloat16)

    # Hidden layers 2..6: bf16 MXU matmuls with f32 accumulation.  Activations are
    # carried in bf16 between layers (cast after the f32 bias-add + ReLU, which is
    # numerically identical to casting right before the next matmul) to halve VPU
    # elementwise slots and live-intermediate VMEM/vreg footprint at large tiles.
    for k in range(4):
        z = jnp.dot(hb, wh_ref[k], preferred_element_type=jnp.float32) + bh_ref[k]
        hb = jnp.maximum(z, 0.0).astype(jnp.bfloat16)
    z = jnp.dot(hb, wh_ref[4], preferred_element_type=jnp.float32) + bh_ref[4]
    h_last = jnp.maximum(z, 0.0)                 # keep f32 for the final reduction

    # Output layer (fan_out == 1): cross-lane reduction on the XLU; write (tm, 1)
    # directly -- only 4 B/row of HBM writeback, no redundant slab, no slab re-read.
    o_ref[...] = (jnp.sum(h_last * w7_ref[...], axis=-1, keepdims=True)
                  + b7_ref[...])


def init_params(key):
    """Deterministic init mimicking torch.nn.Linear default U(-1/sqrt(fan_in), ..)."""
    sizes = [(1, UNITS)] + [(UNITS, UNITS)] * 5 + [(UNITS, 1)]
    params = []
    for (fan_in, fan_out) in sizes:
        key, kw, kb = jax.random.split(key, 3)
        bound = 1.0 / jnp.sqrt(jnp.float32(fan_in))
        w = jax.random.uniform(kw, (fan_in, fan_out), jnp.float32, -bound, bound)
        b = jax.random.uniform(kb, (fan_out,), jnp.float32, -bound, bound)
        params.append((w, b))
    return params


def pad_params(params):
    """Zero-pad + repack weights into the kernel's layout.

    Returns (w1 (1,384) f32, b1 (1,384) f32, wh (5,384,384) bf16, bh (5,1,384) f32,
             w7_row (1,384) f32, b7 (1,1) f32).
    """
    w1, b1 = params[0]
    w1_p = jnp.zeros((1, UNITS_PAD), jnp.float32).at[:, :UNITS].set(w1)
    b1_p = jnp.zeros((1, UNITS_PAD), jnp.float32).at[0, :UNITS].set(b1)

    wh_list, bh_list = [], []
    for (w, b) in params[1:6]:
        w_p = jnp.zeros((UNITS_PAD, UNITS_PAD), jnp.float32).at[:UNITS, :UNITS].set(w)
        wh_list.append(w_p.astype(jnp.bfloat16))
        bh_list.append(jnp.zeros((1, UNITS_PAD), jnp.float32).at[0, :UNITS].set(b))
    wh = jnp.stack(wh_list)                 # (5, 384, 384) bf16
    bh = jnp.stack(bh_list)                 # (5, 1, 384) f32

    w7, b7 = params[6]                      # (300, 1), (1,)
    w7_p = jnp.zeros((1, UNITS_PAD), jnp.float32).at[0, :UNITS].set(w7[:, 0])
    b7_p = jnp.reshape(b7, (1, 1)).astype(jnp.float32)

    return (w1_p, b1_p, wh, bh, w7_p, b7_p)


def _round_up(v, m):
    return ((v + m - 1) // m) * m


@functools.lru_cache(maxsize=None)
def _vmem_budget_bytes():
    """Per-generation scoped-VMEM budget: ~3/4 of physical VMEM, capped at 64 MiB.

    v7x (64 MiB physical) -> 48 MiB; v5e/v6e (128 MiB) -> 64 MiB.
    """
    try:
        cap = pltpu.get_tpu_info().vmem_capacity_bytes
    except Exception:
        cap = 64 * 1024 * 1024              # conservative (v7x-sized) fallback
    return int(min(64 * 1024 * 1024, (cap * 3) // 4))


def _vmem_estimate_bytes(tm):
    """Rough kernel VMEM footprint for a batch tile of `tm` rows."""
    weights = 2 * (5 * UNITS_PAD * UNITS_PAD * 2 + 8 * UNITS_PAD * 4 + 256)  # dbl-buffered
    io = 2 * 2 * tm * 128 * 4              # (tm,1) x/out blocks, lane-padded, dbl-buffered
    temps = 3 * tm * UNITS_PAD * 4         # live f32/bf16 intermediates (conservative)
    return weights + io + temps


@functools.partial(jax.jit, static_argnames=("tile_m",))
def nn_forward(x, padded, *, tile_m=2048):
    """x: (N, 1) float32 -> (N, 1) float32, same semantics as NN.forward."""
    w1_p, b1_p, wh, bh, w7_p, b7_p = padded

    n = x.shape[0]
    n8 = _round_up(max(n, 1), 8)           # sublane-align the batch
    budget = _vmem_budget_bytes()

    tile_m = _round_up(max(int(tile_m), 256), 256)   # MXU-friendly tile quantum
    if n8 <= 256:
        tm = n8                                      # one small tile
    else:
        # Guarantee >= 2 grid steps so both v7x TensorCores get work via the
        # "parallel" grid axis; extra step costs ~0.35 us on single-core chips.
        tm = min(tile_m, _round_up(pl.cdiv(n8, 2), 256))
        while tm > 256 and _vmem_estimate_bytes(tm) > budget:
            tm -= 256                                # stay within the VMEM budget
    n_pad = _round_up(n8, tm)

    x_p = jnp.zeros((n_pad, 1), jnp.float32).at[:n, :].set(x.astype(jnp.float32))

    grid = (n_pad // tm,)

    # Weights/biases use constant index_maps -> DMA'd once and VMEM-resident across
    # grid steps; only the (tm,1) batch tiles stream.  The whole weight stack is
    # ~1.6 MiB bf16, so default double-buffering costs ~1.6 MiB extra -- negligible
    # against the budget, hence no single-buffering override.
    in_specs = [
        pl.BlockSpec((tm, 1), lambda i: (i, 0)),                       # x tile
        pl.BlockSpec((1, UNITS_PAD), lambda i: (0, 0)),                # w1
        pl.BlockSpec((1, UNITS_PAD), lambda i: (0, 0)),                # b1
        pl.BlockSpec((5, UNITS_PAD, UNITS_PAD), lambda i: (0, 0, 0)),  # hidden W (bf16)
        pl.BlockSpec((5, 1, UNITS_PAD), lambda i: (0, 0, 0)),          # hidden b
        pl.BlockSpec((1, UNITS_PAD), lambda i: (0, 0)),                # w7 row
        pl.BlockSpec((1, 1), lambda i: (0, 0)),                        # b7
    ]
    out_specs = pl.BlockSpec((tm, 1), lambda i: (i, 0))

    out = pl.pallas_call(
        _mlp_kernel,
        out_shape=jax.ShapeDtypeStruct((n_pad, 1), jnp.float32),
        grid=grid,
        in_specs=in_specs,
        out_specs=out_specs,
        compiler_params=pltpu.CompilerParams(
            dimension_semantics=("parallel",),   # shard batch tiles across TCs (v7x)
            vmem_limit_bytes=budget,             # generation-aware scoped-VMEM limit
        ),
    )(x_p, w1_p, b1_p, wh, bh, w7_p, b7_p)

    # Rows >= n are padding garbage; always slice.
    return out[:n, :]


def reference_forward(x, params):
    """Pure-JAX reference matching the kernel's mixed precision exactly."""
    w1, b1 = params[0]
    h = jnp.maximum(x * w1 + b1, 0.0)                       # f32 VPU path, fan_in == 1
    for (w, b) in params[1:6]:
        h = jnp.maximum(
            jnp.dot(h.astype(jnp.bfloat16), w.astype(jnp.bfloat16),
                    preferred_element_type=jnp.float32) + b, 0.0)
    w7, b7 = params[6]
    return jnp.sum(h * w7[:, 0], axis=-1, keepdims=True) + b7   # f32 reduce, fan_out == 1


if __name__ == "__main__":
    key = jax.random.PRNGKey(0)
    key_p, key_x1, key_x2 = jax.random.split(key, 3)

    params = init_params(key_p)
    padded = pad_params(params)

    # Small example input consistent with Linear(1, ...): (batch=8, features=1)
    x = jax.random.normal(key_x1, (8, 1), jnp.float32)
    y = jax.block_until_ready(nn_forward(x, padded))
    y_ref = reference_forward(x, params)
    assert y.shape == (8, 1)
    assert jnp.allclose(y, y_ref, atol=1e-3, rtol=1e-3), (y, y_ref)

    # Larger batch exercising the multi-step batch grid and row padding.
    x2 = jax.random.normal(key_x2, (1000, 1), jnp.float32)
    y2 = jax.block_until_ready(nn_forward(x2, padded))
    y2_ref = reference_forward(x2, params)
    assert y2.shape == (1000, 1)
    assert jnp.allclose(y2, y2_ref, atol=1e-3, rtol=1e-3)

    print("KERNEL_OK")
</pallas_src>

<mosaic_0001>
module attributes {stable_mosaic.version = 11 : i64} {
  func.func @_mlp_kernel(%arg0: i32, %arg1: memref<8x1xf32, #tpu.memory_space<vmem>>, %arg2: memref<1x384xf32, #tpu.memory_space<vmem>>, %arg3: memref<1x384xf32, #tpu.memory_space<vmem>>, %arg4: memref<5x384x384xbf16, #tpu.memory_space<vmem>>, %arg5: memref<5x1x384xf32, #tpu.memory_space<vmem>>, %arg6: memref<1x384xf32, #tpu.memory_space<vmem>>, %arg7: memref<1x1xf32, #tpu.memory_space<vmem>>, %arg8: memref<8x1xf32, #tpu.memory_space<vmem>>) attributes {dimension_semantics = [#tpu.dimension_semantics<parallel>], iteration_bounds = array<i64: 1>, scalar_prefetch = 0 : i64, scratch_operands = 0 : i64, tpu.core_type = #tpu.core_type<tc>, window_params = [{transform_indices = @transform_0, window_bounds = array<i64: 8, 1>}, {pipeline_mode = #tpu.pipeline_mode<synchronous>, transform_indices = @transform_1, window_bounds = array<i64: 1, 384>}, {pipeline_mode = #tpu.pipeline_mode<synchronous>, transform_indices = @transform_2, window_bounds = array<i64: 1, 384>}, {pipeline_mode = #tpu.pipeline_mode<synchronous>, transform_indices = @transform_3, window_bounds = array<i64: 5, 384, 384>}, {pipeline_mode = #tpu.pipeline_mode<synchronous>, transform_indices = @transform_4, window_bounds = array<i64: 5, 1, 384>}, {pipeline_mode = #tpu.pipeline_mode<synchronous>, transform_indices = @transform_5, window_bounds = array<i64: 1, 384>}, {pipeline_mode = #tpu.pipeline_mode<synchronous>, transform_indices = @transform_6, window_bounds = array<i64: 1, 1>}, {transform_indices = @transform_7, window_bounds = array<i64: 8, 1>}]} {
    %c0 = arith.constant 0 : index
    %c0_0 = arith.constant 0 : index
    %0 = vector.load %arg1[%c0, %c0_0] : memref<8x1xf32, #tpu.memory_space<vmem>>, vector<8x1xf32>
    %c0_1 = arith.constant 0 : index
    %c0_2 = arith.constant 0 : index
    %1 = vector.load %arg2[%c0_1, %c0_2] : memref<1x384xf32, #tpu.memory_space<vmem>>, vector<1x384xf32>
    %2 = vector.broadcast %0 : vector<8x1xf32> to vector<8x384xf32>
    %3 = vector.broadcast %1 : vector<1x384xf32> to vector<8x384xf32>
    %4 = arith.mulf %2, %3 : vector<8x384xf32>
    %c0_3 = arith.constant 0 : index
    %c0_4 = arith.constant 0 : index
    %5 = vector.load %arg3[%c0_3, %c0_4] : memref<1x384xf32, #tpu.memory_space<vmem>>, vector<1x384xf32>
    %6 = vector.broadcast %5 : vector<1x384xf32> to vector<8x384xf32>
    %7 = arith.addf %4, %6 : vector<8x384xf32>
    %cst = arith.constant 0.000000e+00 : f32
    %8 = vector.broadcast %cst : f32 to vector<8x384xf32>
    %9 = arith.maximumf %7, %8 : vector<8x384xf32>
    %10 = arith.truncf %9 : vector<8x384xf32> to vector<8x384xbf16>
    %c0_5 = arith.constant 0 : index
    %c0_6 = arith.constant 0 : index
    %c0_7 = arith.constant 0 : index
    %11 = vector.load %arg4[%c0_5, %c0_6, %c0_7] : memref<5x384x384xbf16, #tpu.memory_space<vmem>>, vector<1x384x384xbf16>
    %12 = vector.shape_cast %11 : vector<1x384x384xbf16> to vector<384x384xbf16>
    %cst_8 = arith.constant dense<0.000000e+00> : vector<8x384xf32>
    %13 = tpu.matmul %10, %12, %cst_8 {dimension_numbers = #tpu.dot_dimension_numbers<[1], [0], [0], [1], [0, 0, 1, 1], [], []>} : vector<8x384xbf16>, vector<384x384xbf16>, vector<8x384xf32> -> vector<8x384xf32>
    %c0_9 = arith.constant 0 : index
    %c0_10 = arith.constant 0 : index
    %c0_11 = arith.constant 0 : index
    %14 = vector.load %arg5[%c0_9, %c0_10, %c0_11] : memref<5x1x384xf32, #tpu.memory_space<vmem>>, vector<1x1x384xf32>
    %15 = vector.shape_cast %14 : vector<1x1x384xf32> to vector<1x384xf32>
    %16 = vector.broadcast %15 : vector<1x384xf32> to vector<8x384xf32>
    %17 = arith.addf %13, %16 : vector<8x384xf32>
    %cst_12 = arith.constant 0.000000e+00 : f32
    %18 = vector.broadcast %cst_12 : f32 to vector<8x384xf32>
    %19 = arith.maximumf %17, %18 : vector<8x384xf32>
    %20 = arith.truncf %19 : vector<8x384xf32> to vector<8x384xbf16>
    %c1 = arith.constant 1 : index
    %c0_13 = arith.constant 0 : index
    %c0_14 = arith.constant 0 : index
    %21 = vector.load %arg4[%c1, %c0_13, %c0_14] : memref<5x384x384xbf16, #tpu.memory_space<vmem>>, vector<1x384x384xbf16>
    %22 = vector.shape_cast %21 : vector<1x384x384xbf16> to vector<384x384xbf16>
    %cst_15 = arith.constant dense<0.000000e+00> : vector<8x384xf32>
    %23 = tpu.matmul %20, %22, %cst_15 {dimension_numbers = #tpu.dot_dimension_numbers<[1], [0], [0], [1], [0, 0, 1, 1], [], []>} : vector<8x384xbf16>, vector<384x384xbf16>, vector<8x384xf32> -> vector<8x384xf32>
    %c1_16 = arith.constant 1 : index
    %c0_17 = arith.constant 0 : index
    %c0_18 = arith.constant 0 : index
    %24 = vector.load %arg5[%c1_16, %c0_17, %c0_18] : memref<5x1x384xf32, #tpu.memory_space<vmem>>, vector<1x1x384xf32>
    %25 = vector.shape_cast %24 : vector<1x1x384xf32> to vector<1x384xf32>
    %26 = vector.broadcast %25 : vector<1x384xf32> to vector<8x384xf32>
    %27 = arith.addf %23, %26 : vector<8x384xf32>
    %cst_19 = arith.constant 0.000000e+00 : f32
    %28 = vector.broadcast %cst_19 : f32 to vector<8x384xf32>
    %29 = arith.maximumf %27, %28 : vector<8x384xf32>
    %30 = arith.truncf %29 : vector<8x384xf32> to vector<8x384xbf16>
    %c2 = arith.constant 2 : index
    %c0_20 = arith.constant 0 : index
    %c0_21 = arith.constant 0 : index
    %31 = vector.load %arg4[%c2, %c0_20, %c0_21] : memref<5x384x384xbf16, #tpu.memory_space<vmem>>, vector<1x384x384xbf16>
    %32 = vector.shape_cast %31 : vector<1x384x384xbf16> to vector<384x384xbf16>
    %cst_22 = arith.constant dense<0.000000e+00> : vector<8x384xf32>
    %33 = tpu.matmul %30, %32, %cst_22 {dimension_numbers = #tpu.dot_dimension_numbers<[1], [0], [0], [1], [0, 0, 1, 1], [], []>} : vector<8x384xbf16>, vector<384x384xbf16>, vector<8x384xf32> -> vector<8x384xf32>
    %c2_23 = arith.constant 2 : index
    %c0_24 = arith.constant 0 : index
    %c0_25 = arith.constant 0 : index
    %34 = vector.load %arg5[%c2_23, %c0_24, %c0_25] : memref<5x1x384xf32, #tpu.memory_space<vmem>>, vector<1x1x384xf32>
    %35 = vector.shape_cast %34 : vector<1x1x384xf32> to vector<1x384xf32>
    %36 = vector.broadcast %35 : vector<1x384xf32> to vector<8x384xf32>
    %37 = arith.addf %33, %36 : vector<8x384xf32>
    %cst_26 = arith.constant 0.000000e+00 : f32
    %38 = vector.broadcast %cst_26 : f32 to vector<8x384xf32>
    %39 = arith.maximumf %37, %38 : vector<8x384xf32>
    %40 = arith.truncf %39 : vector<8x384xf32> to vector<8x384xbf16>
    %c3 = arith.constant 3 : index
    %c0_27 = arith.constant 0 : index
    %c0_28 = arith.constant 0 : index
    %41 = vector.load %arg4[%c3, %c0_27, %c0_28] : memref<5x384x384xbf16, #tpu.memory_space<vmem>>, vector<1x384x384xbf16>
    %42 = vector.shape_cast %41 : vector<1x384x384xbf16> to vector<384x384xbf16>
    %cst_29 = arith.constant dense<0.000000e+00> : vector<8x384xf32>
    %43 = tpu.matmul %40, %42, %cst_29 {dimension_numbers = #tpu.dot_dimension_numbers<[1], [0], [0], [1], [0, 0, 1, 1], [], []>} : vector<8x384xbf16>, vector<384x384xbf16>, vector<8x384xf32> -> vector<8x384xf32>
    %c3_30 = arith.constant 3 : index
    %c0_31 = arith.constant 0 : index
    %c0_32 = arith.constant 0 : index
    %44 = vector.load %arg5[%c3_30, %c0_31, %c0_32] : memref<5x1x384xf32, #tpu.memory_space<vmem>>, vector<1x1x384xf32>
    %45 = vector.shape_cast %44 : vector<1x1x384xf32> to vector<1x384xf32>
    %46 = vector.broadcast %45 : vector<1x384xf32> to vector<8x384xf32>
    %47 = arith.addf %43, %46 : vector<8x384xf32>
    %cst_33 = arith.constant 0.000000e+00 : f32
    %48 = vector.broadcast %cst_33 : f32 to vector<8x384xf32>
    %49 = arith.maximumf %47, %48 : vector<8x384xf32>
    %50 = arith.truncf %49 : vector<8x384xf32> to vector<8x384xbf16>
    %c4 = arith.constant 4 : index
    %c0_34 = arith.constant 0 : index
    %c0_35 = arith.constant 0 : index
    %51 = vector.load %arg4[%c4, %c0_34, %c0_35] : memref<5x384x384xbf16, #tpu.memory_space<vmem>>, vector<1x384x384xbf16>
    %52 = vector.shape_cast %51 : vector<1x384x384xbf16> to vector<384x384xbf16>
    %cst_36 = arith.constant dense<0.000000e+00> : vector<8x384xf32>
    %53 = tpu.matmul %50, %52, %cst_36 {dimension_numbers = #tpu.dot_dimension_numbers<[1], [0], [0], [1], [0, 0, 1, 1], [], []>} : vector<8x384xbf16>, vector<384x384xbf16>, vector<8x384xf32> -> vector<8x384xf32>
    %c4_37 = arith.constant 4 : index
    %c0_38 = arith.constant 0 : index
    %c0_39 = arith.constant 0 : index
    %54 = vector.load %arg5[%c4_37, %c0_38, %c0_39] : memref<5x1x384xf32, #tpu.memory_space<vmem>>, vector<1x1x384xf32>
    %55 = vector.shape_cast %54 : vector<1x1x384xf32> to vector<1x384xf32>
    %56 = vector.broadcast %55 : vector<1x384xf32> to vector<8x384xf32>
    %57 = arith.addf %53, %56 : vector<8x384xf32>
    %cst_40 = arith.constant 0.000000e+00 : f32
    %58 = vector.broadcast %cst_40 : f32 to vector<8x384xf32>
    %59 = arith.maximumf %57, %58 : vector<8x384xf32>
    %c0_41 = arith.constant 0 : index
    %c0_42 = arith.constant 0 : index
    %60 = vector.load %arg6[%c0_41, %c0_42] : memref<1x384xf32, #tpu.memory_space<vmem>>, vector<1x384xf32>
    %61 = vector.broadcast %60 : vector<1x384xf32> to vector<8x384xf32>
    %62 = arith.mulf %59, %61 : vector<8x384xf32>
    %cst_43 = arith.constant dense<0.000000e+00> : vector<8xf32>
    %63 = vector.multi_reduction <add>, %62, %cst_43 [1] : vector<8x384xf32> to vector<8xf32>
    %64 = vector.shape_cast %63 : vector<8xf32> to vector<8x1xf32>
    %c0_44 = arith.constant 0 : index
    %c0_45 = arith.constant 0 : index
    %65 = vector.load %arg7[%c0_44, %c0_45] : memref<1x1xf32, #tpu.memory_space<vmem>>, vector<1x1xf32>
    %66 = vector.broadcast %65 : vector<1x1xf32> to vector<8x1xf32>
    %67 = arith.addf %64, %66 : vector<8x1xf32>
    %c0_46 = arith.constant 0 : index
    %c0_47 = arith.constant 0 : index
    %68 = vector.load %arg8[%c0_46, %c0_47] : memref<8x1xf32, #tpu.memory_space<vmem>>, vector<8x1xf32>
    tpu.vector_store %arg8[%c0_46, %c0_47], %67 {strides = array<i32>} : memref<8x1xf32, #tpu.memory_space<vmem>>, vector<8x1xf32>,
    return
  }
  func.func @transform_0(%arg0: i32) -> (i32, i32) {
    %c0_i32 = arith.constant 0 : i32
    %c0_i32_0 = arith.constant 0 : i32
    return %arg0, %c0_i32 : i32, i32
  }
  func.func @transform_1(%arg0: i32) -> (i32, i32) {
    %c0_i32 = arith.constant 0 : i32
    %c0_i32_0 = arith.constant 0 : i32
    %c0_i32_1 = arith.constant 0 : i32
    return %c0_i32, %c0_i32_0 : i32, i32
  }
  func.func @transform_2(%arg0: i32) -> (i32, i32) {
    %c0_i32 = arith.constant 0 : i32
    %c0_i32_0 = arith.constant 0 : i32
    %c0_i32_1 = arith.constant 0 : i32
    return %c0_i32, %c0_i32_0 : i32, i32
  }
  func.func @transform_3(%arg0: i32) -> (i32, i32, i32) {
    %c0_i32 = arith.constant 0 : i32
    %c0_i32_0 = arith.constant 0 : i32
    %c0_i32_1 = arith.constant 0 : i32
    %c0_i32_2 = arith.constant 0 : i32
    return %c0_i32, %c0_i32_0, %c0_i32_1 : i32, i32, i32
  }
  func.func @transform_4(%arg0: i32) -> (i32, i32, i32) {
    %c0_i32 = arith.constant 0 : i32
    %c0_i32_0 = arith.constant 0 : i32
    %c0_i32_1 = arith.constant 0 : i32
    %c0_i32_2 = arith.constant 0 : i32
    return %c0_i32, %c0_i32_0, %c0_i32_1 : i32, i32, i32
  }
  func.func @transform_5(%arg0: i32) -> (i32, i32) {
    %c0_i32 = arith.constant 0 : i32
    %c0_i32_0 = arith.constant 0 : i32
    %c0_i32_1 = arith.constant 0 : i32
    return %c0_i32, %c0_i32_0 : i32, i32
  }
  func.func @transform_6(%arg0: i32) -> (i32, i32) {
    %c0_i32 = arith.constant 0 : i32
    %c0_i32_0 = arith.constant 0 : i32
    %c0_i32_1 = arith.constant 0 : i32
    return %c0_i32, %c0_i32_0 : i32, i32
  }
  func.func @transform_7(%arg0: i32) -> (i32, i32) {
    %c0_i32 = arith.constant 0 : i32
    %c0_i32_0 = arith.constant 0 : i32
    return %arg0, %c0_i32 : i32, i32
  }
}

</mosaic_0001>

<bundles_post_ra>
// kernel: nn_forward.1
= control target key start
LH: loop header
LB: loop body
LE: loop exit
PB: predicated region body
PF: predicated region fallthrough
CT: control target
= control target key end

     0   :  { %s4911_s0 = inlined_call_operand.vmem [shape: f32[8,1], index: 0, kind: input, shape index: {}]   ;;  %s4912_s1 = inlined_call_operand.hbm [shape: f32[1,384], index: 1, kind: input, shape index: {}]   ;;  %s4913_s2 = inlined_call_operand.hbm [shape: f32[1,384], index: 2, kind: input, shape index: {}]   ;;  %s4914_s3 = inlined_call_operand.hbm [shape: bf16[5,384,384], index: 3, kind: input, shape index: {}]   ;;  %s4915_s4 = inlined_call_operand.hbm [shape: f32[5,1,384], index: 4, kind: input, shape index: {}]   ;;  %s4916_s5 = inlined_call_operand.hbm [shape: f32[1,384], index: 5, kind: input, shape index: {}]   ;;  %s4917_s6 = inlined_call_operand.<no memory space> [shape: f32[1,1], index: 6, kind: input, shape index: {}]   ;;  %s4918_s7 = inlined_call_operand.vmem [shape: f32[8,1], index: 7, kind: output, shape index: {}]  }
   0x1   :  { %v12_v0 = vstv %s4917_s6 }
   0x2   :  { %13 = vst [vmem:[#allocation2] sm:$0x1] %v12_v0 }
   0x3   :  { %14 = vsyncpa [#allocation4], 0 }
   0x4   :  { %15 = vsyncpa [#allocation6], 0 }
   0x5   :  { %16 = vsyncpa [#allocation9], 0  ;;  %s4729_s26 = smov [#allocation5]   ;;  %s4730_s28 = smov [#allocation8]  }
   0x6   :  { %s35_s27 = sshll.u32 %s4729_s26, 4  ;;  %s56_s29 = sshll.u32 %s4730_s28, 4  ;;  %s36_s27 = int_to_ptr.vmem [resolvable:$true] %s35_s27  ;;  %s57_s29 = int_to_ptr.vmem [resolvable:$true] %s56_s29 }
   0x7   :  { %s4631_s30 = scalar_lea.vmem %s36_s27, 48  ;;  %s4635_s8 = scalar_lea.vmem %s36_s27, 64 }
   0x8   :  { %p4632_p0 = scmp.ne.s32.totalorder %s36_s27, %s4631_s30  ;;  %p4636_p1 = scmp.lt.s32.totalorder %s36_s27, %s36_s27 }
   0x9   :  { %p4637_p2 = scmp.lt.s32.totalorder %s4635_s8, %s4631_s30 }
   0xb   :  { %p4638_p3 = por %p4637_p2, %p4636_p1 }
   0xd   :  { %p4639_p4 = pnand %p4638_p3, %p4632_p0 }
   0xf   :  { %4642 = shalt.err (!%p4639_p4)
}
  0x10   :  { %38 = dma.hbm_to_vmem [thread:$0]  %s4913_s2, 48, %s36_s27, [#allocation6]  }
  0x11   :  { %s4651_s10 = scalar_lea.vmem %s57_s29, 240  ;;  %s4655_s11 = scalar_lea.vmem %s57_s29, 256 }
  0x12   :  { %p4652_p5 = scmp.ne.s32.totalorder %s57_s29, %s4651_s10  ;;  %p4656_p6 = scmp.lt.s32.totalorder %s57_s29, %s57_s29 }
  0x13   :  { %p4657_p7 = scmp.lt.s32.totalorder %s4655_s11, %s4651_s10 }
  0x15   :  { %p4658_p8 = por %p4657_p7, %p4656_p6 }
  0x17   :  { %p4659_p9 = pnand %p4658_p8, %p4652_p5 }
  0x19   :  { %4662 = shalt.err (!%p4659_p9)
}
  0x1a   :  { %s4731_s12 = smov 48   ;;  %s4732_s13 = smov 3  }
  0x1b   :  { %62 = dma.hbm_to_vmem [thread:$0]  %s4915_s4, 240, %s57_s29, [#allocation9], %s4731_s12, %s4731_s12, %s4732_s13  }
  0x1c   :  { %s4733_s16 = smov [#allocation3]   ;;  %s4734_s18 = smov [#allocation7]  }
  0x1d   :  { %s25_s17 = sshll.u32 %s4733_s16, 4  ;;  %s44_s19 = sshll.u32 %s4734_s18, 4  ;;  %s26_s17 = int_to_ptr.vmem [resolvable:$true] %s25_s17  ;;  %s45_s19 = int_to_ptr.vmem [resolvable:$true] %s44_s19 }
  0x1e   :  { %s4671_s2 = scalar_lea.vmem %s26_s17, 48  ;;  %s4675_s20 = scalar_lea.vmem %s26_s17, 64 }
  0x1f   :  { %p4672_p10 = scmp.ne.s32.totalorder %s26_s17, %s4671_s2  ;;  %p4676_p11 = scmp.lt.s32.totalorder %s26_s17, %s26_s17 }
  0x20   :  { %p4677_p12 = scmp.lt.s32.totalorder %s4675_s20, %s4671_s2 }
  0x22   :  { %p4678_p13 = por %p4677_p12, %p4676_p11 }
  0x24   :  { %p4679_p0 = pnand %p4678_p13, %p4672_p10 }
  0x26   :  { %4682 = shalt.err (!%p4679_p0)
}
  0x27   :  { %28 = dma.hbm_to_vmem [thread:$0]  %s4912_s1, 48, %s26_s17, [#allocation4]  }
  0x28   :  { %s4691_s23 = scalar_lea.vmem %s45_s19, 46080  ;;  %p4696_p2 = scmp.lt.s32.totalorder %s45_s19, %s45_s19 }
  0x29   :  { %p4692_p1 = scmp.ne.s32.totalorder %s45_s19, %s4691_s23  ;;  %p4697_p3 = scmp.lt.s32.totalorder %s4691_s23, %s4691_s23 }
  0x2b   :  { %p4698_p4 = por %p4697_p3, %p4696_p2 }
  0x2d   :  { %p4699_p5 = pnand %p4698_p4, %p4692_p1 }
  0x2f   :  { %4702 = shalt.err (!%p4699_p5)
}
  0x30   :  { %s4735_s4 = smov 192   ;;  %s4736_s24 = smov 12  }
  0x31   :  { %50 = dma.hbm_to_vmem [thread:$0]  %s4914_s3, 46080, %s45_s19, [#allocation6], %s4735_s4, %s4735_s4, %s4736_s24  }
  0x32   :  { %s4737_s27 = smov [#allocation10]  }
  0x33   :  { %s69_s28 = sshll.u32 %s4737_s27, 4  ;;  %s70_s28 = int_to_ptr.vmem [resolvable:$true] %s69_s28 }
  0x34   :  { %s4711_s29 = scalar_lea.vmem %s70_s28, 48  ;;  %s4715_s30 = scalar_lea.vmem %s70_s28, 64 }
  0x35   :  { %p4712_p6 = scmp.ne.s32.totalorder %s70_s28, %s4711_s29  ;;  %p4716_p7 = scmp.lt.s32.totalorder %s70_s28, %s70_s28 }
  0x36   :  { %p4717_p8 = scmp.lt.s32.totalorder %s4715_s30, %s4711_s29 }
  0x38   :  { %p4718_p9 = por %p4717_p8, %p4716_p7 }
  0x3a   :  { %p4719_p10 = pnand %p4718_p9, %p4712_p6 }
  0x3c   :  { %4722 = shalt.err (!%p4719_p10)
}
  0x3d   :  { %72 = dma.hbm_to_vmem [thread:$0]  %s4916_s5, 48, %s70_s28, [#allocation9]  }
  0x3e   :  { %4723 = dma.done.wait [#allocation4], 48  }
  0x3f   :  { %4724 = vsyncadd [#allocation4], 4294967248 }
  0x40   :  { %4725 = dma.done.wait [#allocation6], 46128  }
  0x41   :  { %4726 = vsyncadd [#allocation6], 4294921168 }
  0x42   :  { %4727 = dma.done.wait [#allocation9], 288  }
  0x43   :  { %4728 = vsyncadd [#allocation9], 4294967008  ;;  %v4738_v1 = vmov 0   ;;  %v91_v2 = vld [vmem:[%s4911_s0] sm:$0xff]  ;;  %v4152_v9 = vld [vmem:[#allocation7 + $0x64] ss:$12 sps:$4 sm:$0xff]   ;;  %v99_v53 = vlaneseq }
  0x44   :  { %4142 = vset.pattern.permute.xlu0 %v4738_v1  ;;  %713 = vmatprep.mubr.bf16.mxu1 %v4738_v1  ;;  %v4143_v3 = vld [vmem:[#allocation7 + $0xac] ss:$12 sps:$4 sm:$0xff]   ;;  %v4145_v4 = vld [vmem:[#allocation7 + $0xa8] ss:$12 sps:$4 sm:$0xff]   ;;  %v4148_v6 = vld [vmem:[#allocation7 + $0x90] ss:$12 sps:$4 sm:$0xff]  }
  0x45   :  { %95 = vperm.xlu0 %4142, %v91_v2   ;;  %v4146_v5 = vld [vmem:[#allocation7 + $0x94] ss:$12 sps:$4 sm:$0xff]   ;;  %640 = vmatprep.subr.bf16.mxu0 %v4143_v3  ;;  %v4149_v7 = vld [vmem:[#allocation7 + $0x7c] ss:$12 sps:$4 sm:$0xff]   ;;  %v4151_v8 = vld [vmem:[#allocation7 + $0x78] ss:$12 sps:$4 sm:$0xff]  }
  0x46   :  { %641 = vmatpush1.bf16.msra.mxu0 %v4145_v4  ;;  %v4167_v10 = vld [vmem:[#allocation7 + $0x22c] ss:$12 sps:$4 sm:$0xff]   ;;  %v4171_v13 = vld [vmem:[#allocation7 + $0x228] ss:$12 sps:$4 sm:$0xff]   ;;  %v4177_v16 = vld [vmem:[#allocation7 + $0x210] ss:$12 sps:$4 sm:$0xff]  }
  0x47   :  { %642 = vmatprep.subr.bf16.mxu0 %v4146_v5  ;;  %v4154_v11 = vld [vmem:[#allocation7 + $0x60] ss:$12 sps:$4 sm:$0xff]   ;;  %681 = vmatprep.subr.bf16.mxu1 %v4167_v10  ;;  %v4157_v15 = vld [vmem:[#allocation7 + $0x48] ss:$12 sps:$4 sm:$0xff]   ;;  %v4160_v19 = vld [vmem:[#allocation7 + $0x30] ss:$12 sps:$4 sm:$0xff]  }
  0x48   :  { %v4155_v12 = vld [vmem:[#allocation7 + $0x4c] ss:$12 sps:$4 sm:$0xff]   ;;  %v4173_v14 = vld [vmem:[#allocation7 + $0x214] ss:$12 sps:$4 sm:$0xff]   ;;  %682 = vmatpush1.bf16.msra.mxu1 %v4171_v13  ;;  %v4179_v18 = vld [vmem:[#allocation7 + $0x1fc] ss:$12 sps:$4 sm:$0xff]  }
  0x49   :  { %v4158_v17 = vld [vmem:[#allocation7 + $0x34] ss:$12 sps:$4 sm:$0xff]   ;;  %683 = vmatprep.subr.bf16.mxu1 %v4173_v14  ;;  %v4183_v20 = vld [vmem:[#allocation7 + $0x1f8] ss:$12 sps:$4 sm:$0xff]   ;;  %v4161_v22 = vld [vmem:[#allocation7 + $0x1c] ss:$12 sps:$4 sm:$0xff]  }
  0x4a   :  { %643 = vmatpush1.bf16.msra.mxu0 %v4148_v6  ;;  %v4185_v21 = vld [vmem:[#allocation7 + $0x1e4] ss:$12 sps:$4 sm:$0xff]   ;;  %v4189_v24 = vld [vmem:[#allocation7 + $0x1e0] ss:$12 sps:$4 sm:$0xff]   ;;  %v4195_v28 = vld [vmem:[#allocation7 + $0x1c8] ss:$12 sps:$4 sm:$0xff]  }
  0x4b   :  { %644 = vmatprep.subr.bf16.mxu0 %v4149_v7  ;;  %v4163_v23 = vld [vmem:[#allocation7 + $0x18] ss:$12 sps:$4 sm:$0xff]   ;;  %v4166_v27 = vld [vmem:[#allocation7] ss:$12 sps:$4 sm:$0xff]   ;;  %v4201_v31 = vld [vmem:[#allocation7 + $0x1b0] ss:$12 sps:$4 sm:$0xff]  }
  0x4c   :  { %684 = vmatpush1.bf16.msra.mxu1 %v4177_v16  ;;  %v4191_v25 = vld [vmem:[#allocation7 + $0x1cc] ss:$12 sps:$4 sm:$0xff]   ;;  %v4164_v26 = vld [vmem:[#allocation7 + $0x4] ss:$12 sps:$4 sm:$0xff]   ;;  %v4197_v29 = vld [vmem:[#allocation7 + $0x1b4] ss:$12 sps:$4 sm:$0xff]  }
  0x4d   :  { %685 = vmatprep.subr.bf16.mxu1 %v4179_v18  ;;  %v4169_v30 = vld [vmem:[#allocation7 + $0x16c] ss:$12 sps:$4 sm:$0xff]   ;;  %v4172_v32 = vld [vmem:[#allocation7 + $0x168] ss:$12 sps:$4 sm:$0xff]   ;;  %v4178_v35 = vld [vmem:[#allocation7 + $0x150] ss:$12 sps:$4 sm:$0xff]  }
  0x4e   :  { %645 = vmatpush1.bf16.msra.mxu0 %v4151_v8  ;;  %v4203_v33 = vld [vmem:[#allocation7 + $0x19c] ss:$12 sps:$4 sm:$0xff]   ;;  %v4175_v34 = vld [vmem:[#allocation7 + $0x154] ss:$12 sps:$4 sm:$0xff]   ;;  %v4207_v36 = vld [vmem:[#allocation7 + $0x198] ss:$12 sps:$4 sm:$0xff]  }
  0x4f   :  { %646 = vmatprep.subr.bf16.mxu0 %v4152_v9  ;;  %v4209_v37 = vld [vmem:[#allocation7 + $0x184] ss:$12 sps:$4 sm:$0xff]   ;;  %v4181_v38 = vld [vmem:[#allocation7 + $0x13c] ss:$12 sps:$4 sm:$0xff]   ;;  %v4213_v40 = vld [vmem:[#allocation7 + $0x180] ss:$12 sps:$4 sm:$0xff]  }
  0x50   :  { %686 = vmatpush1.bf16.msra.mxu1 %v4183_v20  ;;  %v4184_v39 = vld [vmem:[#allocation7 + $0x138] ss:$12 sps:$4 sm:$0xff]   ;;  %v4215_v41 = vld [vmem:[#allocation7 + $0x170] ss:$12 sps:$4 sm:$0xff]   ;;  %v4190_v43 = vld [vmem:[#allocation7 + $0x120] ss:$12 sps:$4 sm:$0xff]  }
  0x51   :  { %687 = vmatprep.subr.bf16.mxu1 %v4185_v21  ;;  %v4187_v42 = vld [vmem:[#allocation7 + $0x124] ss:$12 sps:$4 sm:$0xff]   ;;  %v4193_v44 = vld [vmem:[#allocation7 + $0x10c] ss:$12 sps:$4 sm:$0xff]   ;;  %v4196_v45 = vld [vmem:[#allocation7 + $0x108] ss:$12 sps:$4 sm:$0xff]  }
  0x52   :  { %647 = vmatpush1.bf16.msra.mxu0 %v4154_v11  ;;  %v4199_v46 = vld [vmem:[#allocation7 + $0xf4] ss:$12 sps:$4 sm:$0xff]   ;;  %v4202_v47 = vld [vmem:[#allocation7 + $0xf0] ss:$12 sps:$4 sm:$0xff]   ;;  %v4208_v49 = vld [vmem:[#allocation7 + $0xd8] ss:$12 sps:$4 sm:$0xff]  }
  0x53   :  { %648 = vmatprep.subr.bf16.mxu0 %v4155_v12  ;;  %v4205_v48 = vld [vmem:[#allocation7 + $0xdc] ss:$12 sps:$4 sm:$0xff]   ;;  %v4211_v50 = vld [vmem:[#allocation7 + $0xc4] ss:$12 sps:$4 sm:$0xff]   ;;  %v4214_v51 = vld [vmem:[#allocation7 + $0xc0] ss:$12 sps:$4 sm:$0xff]  }
  0x54   :  { %688 = vmatpush1.bf16.msra.mxu1 %v4189_v24  ;;  %v4739_v52 = vmov 0.0   ;;  %v100_v54 = vshrl.u32 %v99_v53, 7  ;;  %v92_v55 = vld [vmem:[#allocation3] sm:$0x7]  ;;  %v117_v59 = vld [vmem:[#allocation5] sm:$0x7] }
  0x55   :  { %689 = vmatprep.subr.bf16.mxu1 %v4191_v25  ;;  %v4216_v10 = vld [vmem:[#allocation7 + $0xb0] ss:$12 sps:$4 sm:$0xff]   ;;  %v4220_v20 = vld [vmem:[#allocation7 + $0x218] ss:$12 sps:$4 sm:$0xff]   ;;  %v4221_v21 = vld [vmem:[#allocation7 + $0x140] ss:$12 sps:$4 sm:$0xff]  }
  0x56   :  { %649 = vmatpush1.bf16.msra.mxu0 %v4157_v15  ;;  %v4805_v56 = vsub.s32 0, %v100_v54  ;;  %v4807_v57 = vsub.s32 1, %v100_v54  ;;  %v4809_v58 = vsub.s32 2, %v100_v54  ;;  %v4217_v14 = vld [vmem:[#allocation7 + $0x230] ss:$12 sps:$4 sm:$0xff]   ;;  %vm4740_vm0 = vmmov 0  }
  0x57   :  { %650 = vmatprep.subr.bf16.mxu0 %v4158_v17  ;;  %v4218_v15 = vld [vmem:[#allocation7 + $0x158] ss:$12 sps:$4 sm:$0xff]   ;;  %v4224_v24 = vld [vmem:[#allocation7 + $0x128] ss:$12 sps:$4 sm:$0xff]   ;;  %vm3505_vm1 = vcmask 7168  }
  0x58   :  { %690 = vmatpush1.bf16.msra.mxu1 %v4195_v28  ;;  %v102_v60 = vrot.slane %v92_v55, %v4805_v56  ;;  %v106_v61 = vrot.slane %v92_v55, %v4807_v57  ;;  %v110_v62 = vrot.slane %v92_v55, %v4809_v58  ;;  %v126_v63 = vrot.slane %v117_v59, %v4807_v57  ;;  %v4225_v25 = vld [vmem:[#allocation7 + $0x68] ss:$12 sps:$4 sm:$0xff]   ;;  %v4228_v28 = vld [vmem:[#allocation7 + $0x50] ss:$12 sps:$4 sm:$0xff]   ;;  %v4257_v53 = vld [vmem:[#allocation7 + $0x258] ss:$12 sps:$4 sm:$0xff]  }
  0x59   :  { %691 = vmatprep.subr.bf16.mxu1 %v4197_v29  ;;  %v130_v0 = vrot.slane %v117_v59, %v4809_v58  ;;  %v122_v2 = vrot.slane %v117_v59, %v4805_v56  ;;  %v4229_v29 = vld [vmem:[#allocation7 + $0x1d0] ss:$12 sps:$4 sm:$0xff]   ;;  %v4260_v55 = vld [vmem:[#allocation7 + $0x240] ss:$12 sps:$4 sm:$0xff]  }
  0x5a   :  { %651 = vmatpush1.bf16.msra.mxu0 %v4160_v19  ;;  %v4219_v19 = vld [vmem:[#allocation7 + $0x98] ss:$12 sps:$4 sm:$0xff]  }
  0x5b   :  { %652 = vmatprep.subr.bf16.mxu0 %v4161_v22  ;;  %v4222_v22 = vld [vmem:[#allocation7 + $0x80] ss:$12 sps:$4 sm:$0xff]   ;;  %v4262_v54 = vld [vmem:[#allocation7 + $0x244] ss:$12 sps:$4 sm:$0xff]  }
  0x5c   :  { %692 = vmatpush1.bf16.msra.mxu1 %v4201_v31  ;;  %v4231_v31 = vld [vmem:[#allocation7 + $0x38] ss:$12 sps:$4 sm:$0xff]  }
  0x5d   :  { %693 = vmatprep.subr.bf16.mxu1 %v4203_v33  ;;  %v4233_v33 = vld [vmem:[#allocation7 + $0xe0] ss:$12 sps:$4 sm:$0xff]  }
  0x5e   :  { %653 = vmatpush1.bf16.msra.mxu0 %v4163_v23  ;;  %v4223_v23 = vld [vmem:[#allocation7 + $0x200] ss:$12 sps:$4 sm:$0xff]  }
  0x5f   :  { %654 = vmatprep.subr.bf16.mxu0 %v4164_v26  ;;  %v4226_v26 = vld [vmem:[#allocation7 + $0x1e8] ss:$12 sps:$4 sm:$0xff]   ;;  %v4265_v59 = vld [vmem:[#allocation7 + $0x3ac] ss:$12 sps:$4 sm:$0xff]  }
  0x60   :  { %694 = vmatpush1.bf16.msra.mxu1 %v4207_v36  ;;  %v4236_v36 = vld [vmem:[#allocation7 + $0xc8] ss:$12 sps:$4 sm:$0xff]  }
  0x61   :  { %695 = vmatprep.subr.bf16.mxu1 %v4209_v37  ;;  %v4237_v37 = vld [vmem:[#allocation7 + $0x8] ss:$12 sps:$4 sm:$0xff]  }
  0x62   :  { %655 = vmatpush1.bf16.msra.mxu0 %v4166_v27  ;;  %v4227_v27 = vld [vmem:[#allocation7 + $0x110] ss:$12 sps:$4 sm:$0xff]  }
  0x63   :  { %656 = vmatprep.subr.bf16.mxu0 %v4169_v30  ;;  %v4230_v30 = vld [vmem:[#allocation7 + $0xf8] ss:$12 sps:$4 sm:$0xff]  }
  0x64   :  { %696 = vmatpush1.bf16.msra.mxu1 %v4213_v40  ;;  %v4239_v40 = vld [vmem:[#allocation7 + $0x2e8] ss:$12 sps:$4 sm:$0xff]  }
  0x65   :  { %3875 = vmatprep.subr.bf16.mxu1 %v4215_v41  ;;  %v4244_v41 = vld [vmem:[#allocation7 + $0x2d4] ss:$12 sps:$4 sm:$0xff]  }
  0x66   :  { %657 = vmatpush2.bf16.msra.mxu0 %v4172_v32  ;;  %v4232_v32 = vld [vmem:[#allocation7 + $0x1b8] ss:$12 sps:$4 sm:$0xff]  }
  0x67   :  { %658 = vmatprep.subr.bf16.mxu0 %v4175_v34  ;;  %v4234_v34 = vld [vmem:[#allocation7 + $0x20] ss:$12 sps:$4 sm:$0xff]  }
  0x6a   :  { %659 = vmatpush2.bf16.msra.mxu0 %v4178_v35  ;;  %v4235_v35 = vld [vmem:[#allocation7 + $0x1a0] ss:$12 sps:$4 sm:$0xff]  }
  0x6b   :  { %660 = vmatprep.subr.bf16.mxu0 %v4181_v38  ;;  %v4238_v38 = vld [vmem:[#allocation7 + $0x188] ss:$12 sps:$4 sm:$0xff]  }
  0x6e   :  { %661 = vmatpush2.bf16.msra.mxu0 %v4184_v39  ;;  %v4241_v39 = vld [vmem:[#allocation7 + $0x2ec] ss:$12 sps:$4 sm:$0xff]  }
  0x6f   :  { %662 = vmatprep.subr.bf16.mxu0 %v4187_v42  ;;  %v4242_v42 = vld [vmem:[#allocation7 + $0x2d0] ss:$12 sps:$4 sm:$0xff]  }
  0x72   :  { %663 = vmatpush2.bf16.msra.mxu0 %v4190_v43  ;;  %v4247_v43 = vld [vmem:[#allocation7 + $0x2bc] ss:$12 sps:$4 sm:$0xff]  }
  0x73   :  { %664 = vmatprep.subr.bf16.mxu0 %v4193_v44  ;;  %v4245_v44 = vld [vmem:[#allocation7 + $0x2b8] ss:$12 sps:$4 sm:$0xff]  }
  0x76   :  { %665 = vmatpush2.bf16.msra.mxu0 %v4196_v45  ;;  %v4250_v45 = vld [vmem:[#allocation7 + $0x2a4] ss:$12 sps:$4 sm:$0xff]  }
  0x77   :  { %666 = vmatprep.subr.bf16.mxu0 %v4199_v46  ;;  %v4248_v46 = vld [vmem:[#allocation7 + $0x2a0] ss:$12 sps:$4 sm:$0xff]  }
  0x7a   :  { %667 = vmatpush2.bf16.msra.mxu0 %v4202_v47  ;;  %v4253_v47 = vld [vmem:[#allocation7 + $0x28c] ss:$12 sps:$4 sm:$0xff]  }
  0x7b   :  { %668 = vmatprep.subr.bf16.mxu0 %v4205_v48  ;;  %v4251_v48 = vld [vmem:[#allocation7 + $0x288] ss:$12 sps:$4 sm:$0xff]  }
  0x7e   :  { %669 = vmatpush2.bf16.msra.mxu0 %v4208_v49  ;;  %v4256_v49 = vld [vmem:[#allocation7 + $0x274] ss:$12 sps:$4 sm:$0xff]  }
  0x7f   :  { %670 = vmatprep.subr.bf16.mxu0 %v4211_v50  ;;  %v4254_v50 = vld [vmem:[#allocation7 + $0x270] ss:$12 sps:$4 sm:$0xff]  }
  0x82   :  { %671 = vmatpush2.bf16.msra.mxu0 %v4214_v51  ;;  %v4259_v51 = vld [vmem:[#allocation7 + $0x25c] ss:$12 sps:$4 sm:$0xff]  }
  0x83   :  { %4030 = vmatprep.subr.bf16.mxu0 %v4739_v52 }
  0xc0   :  { %v96_v3 = vpop.permute.xlu0 %95 }
  0xc1   :  { %v114_v4 = vmul.f32 %v102_v60, %v96_v3  ;;  %v115_v5 = vmul.f32 %v106_v61, %v96_v3  ;;  %v116_v6 = vmul.f32 %v110_v62, %v96_v3  ;;  %v4263_v60 = vld [vmem:[#allocation7 + $0x3a8] ss:$12 sps:$4 sm:$0xff]   ;;  %v4266_v62 = vld [vmem:[#allocation7 + $0x390] ss:$12 sps:$4 sm:$0xff]   ;;  %v4272_v3 = vld [vmem:[#allocation7 + $0x360] ss:$12 sps:$4 sm:$0xff]  }
  0xc2   :  { %v4268_v61 = vld [vmem:[#allocation7 + $0x394] ss:$12 sps:$4 sm:$0xff]  }
  0xc3   :  { %v135_v7 = vadd.f32 %v126_v63, %v115_v5  ;;  %v136_v8 = vadd.f32 %v130_v0, %v116_v6  ;;  %v134_v9 = vadd.f32 %v122_v2, %v114_v4  ;;  %v4271_v63 = vld [vmem:[#allocation7 + $0x37c] ss:$12 sps:$4 sm:$0xff]   ;;  %v4269_v0 = vld [vmem:[#allocation7 + $0x378] ss:$12 sps:$4 sm:$0xff]  }
  0xc4   :  { %v4274_v2 = vld [vmem:[#allocation7 + $0x364] ss:$12 sps:$4 sm:$0xff]   ;;  %v4277_v4 = vld [vmem:[#allocation7 + $0x34c] ss:$12 sps:$4 sm:$0xff]   ;;  %v4287_v5 = vld [vmem:[#allocation7 + $0x468] ss:$12 sps:$4 sm:$0xff]  }
  0xc5   :  { %v138_v11 = vmax.f32 %v135_v7, 0.0  ;;  %v139_v12 = vmax.f32 %v136_v8, 0.0  ;;  %v137_v13 = vmax.f32 %v134_v9, 0.0  ;;  %v4289_v6 = vld [vmem:[#allocation7 + $0x46c] ss:$12 sps:$4 sm:$0xff]  }
  0xc6   :  { %v4275_v7 = vld [vmem:[#allocation7 + $0x348] ss:$12 sps:$4 sm:$0xff]   ;;  %v4291_v9 = vld [vmem:[#allocation7 + $0x450] ss:$12 sps:$4 sm:$0xff]  }
  0xc7   :  { %v141_v16 = vpack.c.bf16 %v138_v11, %v138_v11  ;;  %v4817_v17 = vpack.c.bf16 %v139_v12, %v139_v12  ;;  %v140_v18 = vpack.c.bf16 %v137_v13, %v137_v13  ;;  %v4280_v8 = vld [vmem:[#allocation7 + $0x334] ss:$12 sps:$4 sm:$0xff]   ;;  %v4278_v11 = vld [vmem:[#allocation7 + $0x330] ss:$12 sps:$4 sm:$0xff]   ;;  %v4295_v13 = vld [vmem:[#allocation7 + $0x438] ss:$12 sps:$4 sm:$0xff]  }
  0xc8   :  { %v4283_v12 = vld [vmem:[#allocation7 + $0x31c] ss:$12 sps:$4 sm:$0xff]  }
  0xc9   :  { %672 = vmatprep.mubr.bf16.mxu0 %v141_v16  ;;  %714 = vmatmul.mubr.bf16.vlgmr.msra.gmra.mxu1 %v4817_v17 }
  0xca   :  { %3876 = vmatpush3.bf16.msra.mxu1 %v4216_v10  ;;  %673 = vmatmul.mubr.bf16.vlgmr.msra.gmra.mxu0 %v140_v18  ;;  %v4293_v10 = vld [vmem:[#allocation7 + $0x454] ss:$12 sps:$4 sm:$0xff]  }
  0xcb   :  { %754 = vmatprep.mubr.bf16.mxu1 %v141_v16  ;;  %4031 = vmatpush3.bf16.msra.mxu0 %v4217_v14  ;;  %v4297_v14 = vld [vmem:[#allocation7 + $0x43c] ss:$12 sps:$4 sm:$0xff]   ;;  %v4286_v16 = vld [vmem:[#allocation7 + $0x304] ss:$12 sps:$4 sm:$0xff]  }
  0xcc   :  { %3877 = vmatprep.subr.bf16.mxu1 %v4218_v15  ;;  %4032 = vmatprep.subr.bf16.mxu0 %v4739_v52  ;;  %v4281_v15 = vld [vmem:[#allocation7 + $0x318] ss:$12 sps:$4 sm:$0xff]  }
  0xcd   :  { %4046 = vmatprep.mubr.msk.bf16.mxu0 %vm4740_vm0, %v4739_v52 }
  0xce   :  { %3878 = vmatpush3.bf16.msra.mxu1 %v4219_v19  ;;  %v4284_v19 = vld [vmem:[#allocation7 + $0x300] ss:$12 sps:$4 sm:$0xff]  }
  0xcf   :  { %4033 = vmatpush3.bf16.msra.mxu0 %v4220_v20  ;;  %3879 = vmatprep.subr.bf16.mxu1 %v4221_v21  ;;  %v4303_v20 = vld [vmem:[#allocation7 + $0x408] ss:$12 sps:$4 sm:$0xff]   ;;  %v4305_v21 = vld [vmem:[#allocation7 + $0x40c] ss:$12 sps:$4 sm:$0xff]  }
  0xd0   :  { %4034 = vmatprep.subr.bf16.mxu0 %v4739_v52 }
  0xd2   :  { %3880 = vmatpush3.bf16.msra.mxu1 %v4222_v22  ;;  %v4309_v22 = vld [vmem:[#allocation7 + $0x3f4] ss:$12 sps:$4 sm:$0xff]  }
  0xd3   :  { %4035 = vmatpush3.bf16.msra.mxu0 %v4223_v23  ;;  %3881 = vmatprep.subr.bf16.mxu1 %v4224_v24  ;;  %v4307_v23 = vld [vmem:[#allocation7 + $0x3f0] ss:$12 sps:$4 sm:$0xff]  }
  0xd4   :  { %4036 = vmatprep.subr.bf16.mxu0 %v4739_v52  ;;  %v4313_v24 = vld [vmem:[#allocation7 + $0x3dc] ss:$12 sps:$4 sm:$0xff]  }
  0xd6   :  { %3882 = vmatpush3.bf16.msra.mxu1 %v4225_v25  ;;  %v4311_v25 = vld [vmem:[#allocation7 + $0x3d8] ss:$12 sps:$4 sm:$0xff]  }
  0xd7   :  { %4037 = vmatpush3.bf16.msra.mxu0 %v4226_v26  ;;  %3883 = vmatprep.subr.bf16.mxu1 %v4227_v27  ;;  %v4317_v26 = vld [vmem:[#allocation7 + $0x3c4] ss:$12 sps:$4 sm:$0xff]   ;;  %v4315_v27 = vld [vmem:[#allocation7 + $0x3c0] ss:$12 sps:$4 sm:$0xff]  }
  0xd8   :  { %4038 = vmatprep.subr.bf16.mxu0 %v4739_v52 }
  0xda   :  { %3884 = vmatpush3.bf16.msra.mxu1 %v4228_v28  ;;  %v4319_v28 = vld [vmem:[#allocation7 + $0x3b0] ss:$12 sps:$4 sm:$0xff]  }
  0xdb   :  { %4039 = vmatpush3.bf16.msra.mxu0 %v4229_v29  ;;  %3885 = vmatprep.subr.bf16.mxu1 %v4230_v30  ;;  %v239_v29 = vld [vmem:[#allocation8] sm:$0x7] }
  0xdc   :  { %4040 = vmatprep.subr.bf16.mxu0 %v4739_v52  ;;  %v244_v30 = vrot.slane %v239_v29, %v4805_v56 }
  0xde   :  { %3886 = vmatpush3.bf16.msra.mxu1 %v4231_v31 }
  0xdf   :  { %4041 = vmatpush3.bf16.msra.mxu0 %v4232_v32  ;;  %3887 = vmatprep.subr.bf16.mxu1 %v4233_v33  ;;  %v248_v32 = vrot.slane %v239_v29, %v4807_v57 }
  0xe0   :  { %4042 = vmatprep.subr.bf16.mxu0 %v4739_v52 }
  0xe2   :  { %3888 = vmatpush3.bf16.msra.mxu1 %v4234_v34 }
  0xe3   :  { %4043 = vmatpush3.bf16.msra.mxu0 %v4235_v35  ;;  %3889 = vmatprep.subr.bf16.mxu1 %v4236_v36 }
  0xe4   :  { %4044 = vmatprep.subr.bf16.mxu0 %v4739_v52 }
  0xe6   :  { %3890 = vmatpush3.bf16.msra.mxu1 %v4237_v37 }
  0xe7   :  { %4045 = vmatpush3.bf16.msra.mxu0 %v4238_v38  ;;  %1307 = vmatprep.subr.bf16.mxu1 %v4241_v39 }
  0xe8   :  { %1348 = vmatprep.subr.bf16.mxu0 %v4289_v6  ;;  %v4318_v6 = vld [vmem:[#allocation7 + $0x3c8] ss:$12 sps:$4 sm:$0xff]  }
  0xe9   :  { %755 = vmatmul.mubr.bf16.vlgmr.msra.gmra.mxu1 %v140_v18  ;;  %v4301_v18 = vld [vmem:[#allocation7 + $0x424] ss:$12 sps:$4 sm:$0xff]  }
  0xea   :  { %4047 = vmatmul.mubr.bf16.vlgmr.msra.gmra.mxu0 %v4817_v17  ;;  %1308 = vmatpush1.bf16.msra.mxu1 %v4239_v40  ;;  %v4299_v17 = vld [vmem:[#allocation7 + $0x420] ss:$12 sps:$4 sm:$0xff]  }
  0xeb   :  { %1309 = vmatprep.subr.bf16.mxu1 %v4244_v41  ;;  %1380 = vmatprep.mubr.bf16.mxu0 %v4738_v1 }
  0xec   :  { %1349 = vmatpush1.bf16.msra.mxu0 %v4287_v5 }
  0xed   :  { %1350 = vmatprep.subr.bf16.mxu0 %v4293_v10  ;;  %v4320_v10 = vld [vmem:[#allocation7 + $0x2f0] ss:$12 sps:$4 sm:$0xff]  }
  0xee   :  { %1310 = vmatpush1.bf16.msra.mxu1 %v4242_v42 }
  0xef   :  { %1311 = vmatprep.subr.bf16.mxu1 %v4247_v43 }
  0xf0   :  { %1351 = vmatpush1.bf16.msra.mxu0 %v4291_v9 }
  0xf1   :  { %1352 = vmatprep.subr.bf16.mxu0 %v4297_v14  ;;  %v4323_v14 = vld [vmem:[#allocation7 + $0x380] ss:$12 sps:$4 sm:$0xff]  }
  0xf2   :  { %1312 = vmatpush1.bf16.msra.mxu1 %v4245_v44 }
  0xf3   :  { %1313 = vmatprep.subr.bf16.mxu1 %v4250_v45 }
  0xf4   :  { %1353 = vmatpush1.bf16.msra.mxu0 %v4295_v13  ;;  %v4322_v13 = vld [vmem:[#allocation7 + $0x2d8] ss:$12 sps:$4 sm:$0xff]  }
  0xf5   :  { %1354 = vmatprep.subr.bf16.mxu0 %v4301_v18  ;;  %v4327_v18 = vld [vmem:[#allocation7 + $0x350] ss:$12 sps:$4 sm:$0xff]  }
  0xf6   :  { %1314 = vmatpush1.bf16.msra.mxu1 %v4248_v46 }
  0xf7   :  { %1315 = vmatprep.subr.bf16.mxu1 %v4253_v47  ;;  %v4290_v47 = vld [vmem:[#allocation7 + $0x470] ss:$12 sps:$4 sm:$0xff]  }
  0xf8   :  { %1355 = vmatpush1.bf16.msra.mxu0 %v4299_v17  ;;  %v4326_v17 = vld [vmem:[#allocation7 + $0x2a8] ss:$12 sps:$4 sm:$0xff]  }
  0xf9   :  { %1356 = vmatprep.subr.bf16.mxu0 %v4305_v21  ;;  %v4330_v21 = vld [vmem:[#allocation7 + $0x278] ss:$12 sps:$4 sm:$0xff]  }
  0xfa   :  { %1316 = vmatpush1.bf16.msra.mxu1 %v4251_v48 }
  0xfb   :  { %1317 = vmatprep.subr.bf16.mxu1 %v4256_v49  ;;  %v4294_v49 = vld [vmem:[#allocation7 + $0x458] ss:$12 sps:$4 sm:$0xff]  }
  0xfc   :  { %1357 = vmatpush1.bf16.msra.mxu0 %v4303_v20  ;;  %v4329_v20 = vld [vmem:[#allocation7 + $0x338] ss:$12 sps:$4 sm:$0xff]  }
  0xfd   :  { %1358 = vmatprep.subr.bf16.mxu0 %v4309_v22  ;;  %v4331_v22 = vld [vmem:[#allocation7 + $0x320] ss:$12 sps:$4 sm:$0xff]  }
  0xfe   :  { %1318 = vmatpush1.bf16.msra.mxu1 %v4254_v50  ;;  %v4298_v50 = vld [vmem:[#allocation7 + $0x440] ss:$12 sps:$4 sm:$0xff]  }
  0xff   :  { %1319 = vmatprep.subr.bf16.mxu1 %v4259_v51  ;;  %v4302_v51 = vld [vmem:[#allocation7 + $0x428] ss:$12 sps:$4 sm:$0xff]  }
 0x100   :  { %1359 = vmatpush1.bf16.msra.mxu0 %v4307_v23  ;;  %v4332_v23 = vld [vmem:[#allocation7 + $0x260] ss:$12 sps:$4 sm:$0xff]  }
 0x101   :  { %1360 = vmatprep.subr.bf16.mxu0 %v4313_v24  ;;  %v4333_v24 = vld [vmem:[#allocation7 + $0x308] ss:$12 sps:$4 sm:$0xff]  }
 0x102   :  { %1320 = vmatpush1.bf16.msra.mxu1 %v4257_v53  ;;  %v4306_v53 = vld [vmem:[#allocation7 + $0x410] ss:$12 sps:$4 sm:$0xff]  }
 0x103   :  { %1321 = vmatprep.subr.bf16.mxu1 %v4262_v54  ;;  %v4310_v54 = vld [vmem:[#allocation7 + $0x3f8] ss:$12 sps:$4 sm:$0xff]  }
 0x104   :  { %1361 = vmatpush1.bf16.msra.mxu0 %v4311_v25  ;;  %v4334_v25 = vld [vmem:[#allocation7 + $0x248] ss:$12 sps:$4 sm:$0xff]  }
 0x105   :  { %1362 = vmatprep.subr.bf16.mxu0 %v4317_v26  ;;  %v4337_v26 = vld [vmem:[#allocation7 + $0x52c] ss:$12 sps:$4 sm:$0xff]  }
 0x106   :  { %1322 = vmatpush1.bf16.msra.mxu1 %v4260_v55 }
 0x107   :  { %1323 = vmatprep.subr.bf16.mxu1 %v4265_v59 }
 0x108   :  { %1363 = vmatpush1.bf16.msra.mxu0 %v4315_v27  ;;  %v4335_v27 = vld [vmem:[#allocation7 + $0x528] ss:$12 sps:$4 sm:$0xff]  }
 0x109   :  { %3906 = vmatprep.subr.bf16.mxu0 %v4319_v28  ;;  %v4340_v28 = vld [vmem:[#allocation7 + $0x514] ss:$12 sps:$4 sm:$0xff]  }
 0x10a   :  { %1324 = vmatpush2.bf16.msra.mxu1 %v4263_v60  ;;  %v252_v60 = vrot.slane %v239_v29, %v4809_v58  ;;  %v4338_v29 = vld [vmem:[#allocation7 + $0x510] ss:$12 sps:$4 sm:$0xff]  }
 0x10b   :  { %1325 = vmatprep.subr.bf16.mxu1 %v4268_v61 }
 0x10e   :  { %1326 = vmatpush2.bf16.msra.mxu1 %v4266_v62  ;;  %v4314_v62 = vld [vmem:[#allocation7 + $0x3e0] ss:$12 sps:$4 sm:$0xff]  }
 0x10f   :  { %1327 = vmatprep.subr.bf16.mxu1 %v4271_v63 }
 0x112   :  { %1328 = vmatpush2.bf16.msra.mxu1 %v4269_v0 }
 0x113   :  { %1329 = vmatprep.subr.bf16.mxu1 %v4274_v2 }
 0x116   :  { %1330 = vmatpush2.bf16.msra.mxu1 %v4272_v3 }
 0x117   :  { %1331 = vmatprep.subr.bf16.mxu1 %v4277_v4 }
 0x11a   :  { %1332 = vmatpush2.bf16.msra.mxu1 %v4275_v7 }
 0x11b   :  { %1333 = vmatprep.subr.bf16.mxu1 %v4280_v8 }
 0x11e   :  { %1334 = vmatpush2.bf16.msra.mxu1 %v4278_v11 }
 0x11f   :  { %1335 = vmatprep.subr.bf16.mxu1 %v4283_v12  ;;  %v4321_v12 = vld [vmem:[#allocation7 + $0x398] ss:$12 sps:$4 sm:$0xff]  }
 0x122   :  { %1336 = vmatpush2.bf16.msra.mxu1 %v4281_v15  ;;  %v4324_v15 = vld [vmem:[#allocation7 + $0x2c0] ss:$12 sps:$4 sm:$0xff]  }
 0x123   :  { %1337 = vmatprep.subr.bf16.mxu1 %v4286_v16  ;;  %v4325_v16 = vld [vmem:[#allocation7 + $0x368] ss:$12 sps:$4 sm:$0xff]  }
 0x126   :  { %1338 = vmatpush2.bf16.msra.mxu1 %v4284_v19  ;;  %v4328_v19 = vld [vmem:[#allocation7 + $0x290] ss:$12 sps:$4 sm:$0xff]  }
 0x127   :  { %4050 = vmatprep.subr.bf16.mxu1 %v4739_v52 }
 0x189   :  { %v715_v31 = vpop.f32.mrf.mxu1 }
 0x18a   :  { %v674_v33 = vpop.f32.mrf.mxu0 }
 0x18b   :  { %v675_v34 = vadd.f32 %v674_v33, %v244_v30  ;;  %v717_v35 = vpop.f32.mrf.mxu1  ;;  %v4343_v30 = vld [vmem:[#allocation7 + $0x4fc] ss:$12 sps:$4 sm:$0xff]   ;;  %v4344_v33 = vld [vmem:[#allocation7 + $0x4e0] ss:$12 sps:$4 sm:$0xff]  }
 0x18c   :  { %v676_v36 = vpop.f32.mrf.mxu0 }
 0x18d   :  { %v716_v37 = vadd.f32 %v715_v31, %v675_v34  ;;  %v677_v38 = vadd.f32 %v676_v36, %v248_v32  ;;  %v719_v39 = vpop.f32.mrf.mxu1  ;;  %v4341_v31 = vld [vmem:[#allocation7 + $0x4f8] ss:$12 sps:$4 sm:$0xff]   ;;  %v4352_v36 = vld [vmem:[#allocation7 + $0x4b4] ss:$12 sps:$4 sm:$0xff]  }
 0x18e   :  { %v678_v40 = vpop.f32.mrf.mxu0  ;;  %v4346_v32 = vld [vmem:[#allocation7 + $0x4e4] ss:$12 sps:$4 sm:$0xff]   ;;  %v4349_v34 = vld [vmem:[#allocation7 + $0x4cc] ss:$12 sps:$4 sm:$0xff]  }
 0x18f   :  { %v718_v41 = vadd.f32 %v717_v35, %v677_v38  ;;  %v720_v42 = vpop.f32.mrf.mxu1  ;;  %v802_v43 = vmax.f32 %v716_v37, 0.0  ;;  %v4347_v35 = vld [vmem:[#allocation7 + $0x4c8] ss:$12 sps:$4 sm:$0xff]   ;;  %v4350_v37 = vld [vmem:[#allocation7 + $0x4b0] ss:$12 sps:$4 sm:$0xff]  }
 0x190   :  { %v679_v44 = vpop.f32.mrf.mxu0  ;;  %v4355_v38 = vld [vmem:[#allocation7 + $0x49c] ss:$12 sps:$4 sm:$0xff]   ;;  %v4353_v39 = vld [vmem:[#allocation7 + $0x498] ss:$12 sps:$4 sm:$0xff]  }
 0x191   :  { %v803_v45 = vmax.f32 %v718_v41, 0.0  ;;  %v4834_v48 = vpack.c.bf16 %v802_v43, %v802_v43  ;;  %v4358_v40 = vld [vmem:[#allocation7 + $0x484] ss:$12 sps:$4 sm:$0xff]   ;;  %v4356_v41 = vld [vmem:[#allocation7 + $0x480] ss:$12 sps:$4 sm:$0xff]  }
 0x192   :  { %v4361_v42 = vld [vmem:[#allocation7 + $0x5ec] ss:$12 sps:$4 sm:$0xff]   ;;  %v4359_v43 = vld [vmem:[#allocation7 + $0x5e8] ss:$12 sps:$4 sm:$0xff]  }
 0x193   :  { %v806_v46 = vpack.c.bf16 %v803_v45, %v803_v45  ;;  %v4364_v44 = vld [vmem:[#allocation7 + $0x5d4] ss:$12 sps:$4 sm:$0xff]   ;;  %v4362_v45 = vld [vmem:[#allocation7 + $0x5d0] ss:$12 sps:$4 sm:$0xff]  }
 0x195   :  { %1339 = vmatprep.mubr.bf16.mxu1 %v806_v46 }
 0x196   :  { %1340 = vmatmul.mubr.bf16.vlgmr.msra.gmra.mxu1 %v4834_v48 }
 0x197   :  { %4051 = vmatpush3.bf16.msra.mxu1 %v4290_v47  ;;  %4066 = vmatprep.mubr.msk.bf16.mxu1 %vm4740_vm0, %v4739_v52  ;;  %v4365_v47 = vld [vmem:[#allocation7 + $0x5b8] ss:$12 sps:$4 sm:$0xff]  }
 0x198   :  { %4052 = vmatprep.subr.bf16.mxu1 %v4739_v52 }
 0x19b   :  { %4053 = vmatpush3.bf16.msra.mxu1 %v4294_v49  ;;  %v4368_v49 = vld [vmem:[#allocation7 + $0x5a0] ss:$12 sps:$4 sm:$0xff]  }
 0x19c   :  { %4054 = vmatprep.subr.bf16.mxu1 %v4739_v52 }
 0x19f   :  { %4055 = vmatpush3.bf16.msra.mxu1 %v4298_v50  ;;  %v4373_v50 = vld [vmem:[#allocation7 + $0x58c] ss:$12 sps:$4 sm:$0xff]  }
 0x1a0   :  { %4056 = vmatprep.subr.bf16.mxu1 %v4739_v52 }
 0x1a3   :  { %4057 = vmatpush3.bf16.msra.mxu1 %v4302_v51  ;;  %v4383_v51 = vld [vmem:[#allocation7 + $0x6a8] ss:$12 sps:$4 sm:$0xff]  }
 0x1a4   :  { %4058 = vmatprep.subr.bf16.mxu1 %v4739_v52 }
 0x1a7   :  { %4059 = vmatpush3.bf16.msra.mxu1 %v4306_v53  ;;  %v4385_v53 = vld [vmem:[#allocation7 + $0x6ac] ss:$12 sps:$4 sm:$0xff]  }
 0x1a8   :  { %4060 = vmatprep.subr.bf16.mxu1 %v4739_v52 }
 0x1a9   :  { %v3891_v55 = vpop.f32.mrf.mxu1 }
 0x1aa   :  { %v796_v59 = vpop.f32.mrf.mxu0 }
 0x1ab   :  { %v3892_v61 = vpop.f32.mrf.mxu1  ;;  %4061 = vmatpush3.bf16.msra.mxu1 %v4310_v54  ;;  %v4389_v54 = vld [vmem:[#allocation7 + $0x694] ss:$12 sps:$4 sm:$0xff]  }
 0x1ac   :  { %v3893_v63 = vadd.f32 %v3892_v61, %v3891_v55  ;;  %v4048_v0 = vpop.f32.mrf.mxu0  ;;  %4062 = vmatprep.subr.bf16.mxu1 %v4739_v52  ;;  %v4371_v55 = vld [vmem:[#allocation7 + $0x588] ss:$12 sps:$4 sm:$0xff]  }
 0x1ad   :  { %v3894_v2 = vpop.f32.mrf.mxu1  ;;  %v4393_v61 = vld [vmem:[#allocation7 + $0x67c] ss:$12 sps:$4 sm:$0xff]  }
 0x1ae   :  { %v757_v3 = vadd.f32 %v3893_v63, %v252_v60  ;;  %v799_v4 = vpop.f32.mrf.mxu0  ;;  %v4376_v60 = vld [vmem:[#allocation7 + $0x574] ss:$12 sps:$4 sm:$0xff]   ;;  %v4391_v63 = vld [vmem:[#allocation7 + $0x678] ss:$12 sps:$4 sm:$0xff]   ;;  %v4379_v0 = vld [vmem:[#allocation7 + $0x55c] ss:$12 sps:$4 sm:$0xff]  }
 0x1af   :  { %v3895_v5 = vpop.f32.mrf.mxu1  ;;  %4063 = vmatpush3.bf16.msra.mxu1 %v4314_v62  ;;  %v4374_v62 = vld [vmem:[#allocation7 + $0x570] ss:$12 sps:$4 sm:$0xff]   ;;  %v4395_v4 = vld [vmem:[#allocation7 + $0x660] ss:$12 sps:$4 sm:$0xff]  }
 0x1b0   :  { %v797_v7 = vadd.f32 %v796_v59, %v757_v3  ;;  %v4049_v8 = vpop.f32.mrf.mxu0  ;;  %4064 = vmatprep.subr.bf16.mxu1 %v4739_v52  ;;  %v4387_v59 = vld [vmem:[#allocation7 + $0x690] ss:$12 sps:$4 sm:$0xff]   ;;  %v4377_v3 = vld [vmem:[#allocation7 + $0x558] ss:$12 sps:$4 sm:$0xff]  }
 0x1b1   :  { %v4397_v2 = vld [vmem:[#allocation7 + $0x664] ss:$12 sps:$4 sm:$0xff]   ;;  %v4399_v8 = vld [vmem:[#allocation7 + $0x648] ss:$12 sps:$4 sm:$0xff]  }
 0x1b2   :  { %v804_v9 = vmax.f32 %v797_v7, 0.0  ;;  %v4382_v5 = vld [vmem:[#allocation7 + $0x544] ss:$12 sps:$4 sm:$0xff]   ;;  %v4380_v7 = vld [vmem:[#allocation7 + $0x540] ss:$12 sps:$4 sm:$0xff]  }
 0x1b3   :  { %4065 = vmatpush3.bf16.msra.mxu1 %v4318_v6  ;;  %v4401_v6 = vld [vmem:[#allocation7 + $0x64c] ss:$12 sps:$4 sm:$0xff]  }
 0x1b4   :  { %v807_v11 = vpack.c.bf16 %v804_v9, %v804_v9  ;;  %2015 = vmatprep.subr.bf16.mxu1 %v4385_v53  ;;  %v4405_v9 = vld [vmem:[#allocation7 + $0x634] ss:$12 sps:$4 sm:$0xff]  }
 0x1b6   :  { %1381 = vmatmul.mubr.bf16.vlgmr.msra.gmra.mxu0 %v807_v11  ;;  %4067 = vmatmul.mubr.bf16.vlgmr.msra.gmra.mxu1 %v807_v11  ;;  %v4409_v11 = vld [vmem:[#allocation7 + $0x61c] ss:$12 sps:$4 sm:$0xff]  }
 0x1b7   :  { %3907 = vmatpush3.bf16.msra.mxu0 %v4320_v10  ;;  %1421 = vmatprep.mubr.bf16.mxu0 %v806_v46  ;;  %v4367_v46 = vld [vmem:[#allocation7 + $0x5bc] ss:$12 sps:$4 sm:$0xff]  }
 0x1b8   :  { %3908 = vmatprep.subr.bf16.mxu0 %v4321_v12  ;;  %2047 = vmatprep.mubr.bf16.mxu1 %v4738_v1  ;;  %v4403_v10 = vld [vmem:[#allocation7 + $0x630] ss:$12 sps:$4 sm:$0xff]   ;;  %v4407_v12 = vld [vmem:[#allocation7 + $0x618] ss:$12 sps:$4 sm:$0xff]  }
 0x1b9   :  { %2016 = vmatpush1.bf16.msra.mxu1 %v4383_v51 }
 0x1ba   :  { %2017 = vmatprep.subr.bf16.mxu1 %v4389_v54 }
 0x1bb   :  { %3909 = vmatpush3.bf16.msra.mxu0 %v4322_v13  ;;  %v4413_v13 = vld [vmem:[#allocation7 + $0x604] ss:$12 sps:$4 sm:$0xff]  }
 0x1bc   :  { %3910 = vmatprep.subr.bf16.mxu0 %v4323_v14  ;;  %v4411_v14 = vld [vmem:[#allocation7 + $0x600] ss:$12 sps:$4 sm:$0xff]  }
 0x1bd   :  { %2018 = vmatpush1.bf16.msra.mxu1 %v4387_v59 }
 0x1be   :  { %2019 = vmatprep.subr.bf16.mxu1 %v4393_v61 }
 0x1bf   :  { %3911 = vmatpush3.bf16.msra.mxu0 %v4324_v15  ;;  %v4415_v15 = vld [vmem:[#allocation7 + $0x5f0] ss:$12 sps:$4 sm:$0xff]  }
 0x1c0   :  { %3912 = vmatprep.subr.bf16.mxu0 %v4325_v16 }
 0x1c1   :  { %2020 = vmatpush1.bf16.msra.mxu1 %v4391_v63  ;;  %v4418_v63 = vld [vmem:[#allocation7 + $0x518] ss:$12 sps:$4 sm:$0xff]  }
 0x1c2   :  { %2021 = vmatprep.subr.bf16.mxu1 %v4397_v2  ;;  %v4420_v2 = vld [vmem:[#allocation7 + $0x500] ss:$12 sps:$4 sm:$0xff]  }
 0x1c3   :  { %3913 = vmatpush3.bf16.msra.mxu0 %v4326_v17 }
 0x1c4   :  { %3914 = vmatprep.subr.bf16.mxu0 %v4327_v18 }
 0x1c5   :  { %2022 = vmatpush1.bf16.msra.mxu1 %v4395_v4  ;;  %v4422_v4 = vld [vmem:[#allocation7 + $0x4e8] ss:$12 sps:$4 sm:$0xff]  }
 0x1c6   :  { %2023 = vmatprep.subr.bf16.mxu1 %v4401_v6  ;;  %v4424_v6 = vld [vmem:[#allocation7 + $0x4d0] ss:$12 sps:$4 sm:$0xff]  }
 0x1c7   :  { %3915 = vmatpush3.bf16.msra.mxu0 %v4328_v19 }
 0x1c8   :  { %3916 = vmatprep.subr.bf16.mxu0 %v4329_v20  ;;  %v906_v20 = vld [vmem:[#allocation8 + $0x3] sm:$0x7] }
 0x1c9   :  { %2024 = vmatpush1.bf16.msra.mxu1 %v4399_v8  ;;  %v4426_v8 = vld [vmem:[#allocation7 + $0x4b8] ss:$12 sps:$4 sm:$0xff]  }
 0x1ca   :  { %2025 = vmatprep.subr.bf16.mxu1 %v4405_v9  ;;  %v4427_v9 = vld [vmem:[#allocation7 + $0x560] ss:$12 sps:$4 sm:$0xff]  }
 0x1cb   :  { %3917 = vmatpush3.bf16.msra.mxu0 %v4330_v21  ;;  %v911_v21 = vrot.slane %v906_v20, %v4805_v56 }
 0x1cc   :  { %3918 = vmatprep.subr.bf16.mxu0 %v4331_v22  ;;  %v915_v22 = vrot.slane %v906_v20, %v4807_v57 }
 0x1cd   :  { %2026 = vmatpush1.bf16.msra.mxu1 %v4403_v10  ;;  %v4428_v10 = vld [vmem:[#allocation7 + $0x4a0] ss:$12 sps:$4 sm:$0xff]  }
 0x1ce   :  { %2027 = vmatprep.subr.bf16.mxu1 %v4409_v11  ;;  %v4429_v11 = vld [vmem:[#allocation7 + $0x548] ss:$12 sps:$4 sm:$0xff]  }
 0x1cf   :  { %3919 = vmatpush3.bf16.msra.mxu0 %v4332_v23 }
 0x1d0   :  { %3920 = vmatprep.subr.bf16.mxu0 %v4333_v24 }
 0x1d1   :  { %2028 = vmatpush1.bf16.msra.mxu1 %v4407_v12  ;;  %v4430_v12 = vld [vmem:[#allocation7 + $0x488] ss:$12 sps:$4 sm:$0xff]  }
 0x1d2   :  { %2029 = vmatprep.subr.bf16.mxu1 %v4413_v13  ;;  %v4433_v13 = vld [vmem:[#allocation7 + $0x76c] ss:$12 sps:$4 sm:$0xff]  }
 0x1d3   :  { %3921 = vmatpush3.bf16.msra.mxu0 %v4334_v25 }
 0x1d4   :  { %1974 = vmatprep.subr.bf16.mxu0 %v4337_v26 }
 0x1d5   :  { %2030 = vmatpush1.bf16.msra.mxu1 %v4411_v14  ;;  %v4431_v14 = vld [vmem:[#allocation7 + $0x768] ss:$12 sps:$4 sm:$0xff]  }
 0x1d6   :  { %1422 = vmatmul.mubr.bf16.vlgmr.msra.gmra.mxu0 %v4834_v48  ;;  %v4370_v48 = vld [vmem:[#allocation7 + $0x5a4] ss:$12 sps:$4 sm:$0xff]   ;;  %3937 = vmatprep.subr.bf16.mxu1 %v4415_v15  ;;  %v4436_v15 = vld [vmem:[#allocation7 + $0x754] ss:$12 sps:$4 sm:$0xff]  }
 0x1d7   :  { %1975 = vmatpush1.bf16.msra.mxu0 %v4335_v27 }
 0x1d8   :  { %1976 = vmatprep.subr.bf16.mxu0 %v4340_v28 }
 0x1db   :  { %1977 = vmatpush1.bf16.msra.mxu0 %v4338_v29 }
 0x1dc   :  { %1978 = vmatprep.subr.bf16.mxu0 %v4343_v30 }
 0x1df   :  { %1979 = vmatpush1.bf16.msra.mxu0 %v4341_v31 }
 0x1e0   :  { %1980 = vmatprep.subr.bf16.mxu0 %v4346_v32 }
 0x1e3   :  { %1981 = vmatpush1.bf16.msra.mxu0 %v4344_v33 }
 0x1e4   :  { %1982 = vmatprep.subr.bf16.mxu0 %v4349_v34 }
 0x1e7   :  { %1983 = vmatpush1.bf16.msra.mxu0 %v4347_v35 }
 0x1e8   :  { %1984 = vmatprep.subr.bf16.mxu0 %v4352_v36 }
 0x1eb   :  { %1985 = vmatpush1.bf16.msra.mxu0 %v4350_v37 }
 0x1ec   :  { %1986 = vmatprep.subr.bf16.mxu0 %v4355_v38  ;;  %v4386_v38 = vld [vmem:[#allocation7 + $0x6b0] ss:$12 sps:$4 sm:$0xff]  }
 0x1ef   :  { %1987 = vmatpush1.bf16.msra.mxu0 %v4353_v39 }
 0x1f0   :  { %1988 = vmatprep.subr.bf16.mxu0 %v4358_v40  ;;  %v4390_v40 = vld [vmem:[#allocation7 + $0x698] ss:$12 sps:$4 sm:$0xff]  }
 0x1f3   :  { %1989 = vmatpush1.bf16.msra.mxu0 %v4356_v41  ;;  %v4394_v41 = vld [vmem:[#allocation7 + $0x680] ss:$12 sps:$4 sm:$0xff]  }
 0x1f4   :  { %1990 = vmatprep.subr.bf16.mxu0 %v4361_v42  ;;  %v4398_v42 = vld [vmem:[#allocation7 + $0x668] ss:$12 sps:$4 sm:$0xff]  }
 0x1f7   :  { %1991 = vmatpush2.bf16.msra.mxu0 %v4359_v43  ;;  %v4402_v43 = vld [vmem:[#allocation7 + $0x650] ss:$12 sps:$4 sm:$0xff]  }
 0x1f8   :  { %1992 = vmatprep.subr.bf16.mxu0 %v4364_v44  ;;  %v4406_v44 = vld [vmem:[#allocation7 + $0x638] ss:$12 sps:$4 sm:$0xff]  }
 0x1fb   :  { %1993 = vmatpush2.bf16.msra.mxu0 %v4362_v45  ;;  %v4410_v45 = vld [vmem:[#allocation7 + $0x620] ss:$12 sps:$4 sm:$0xff]  }
 0x1fc   :  { %1994 = vmatprep.subr.bf16.mxu0 %v4367_v46 }
 0x1ff   :  { %1995 = vmatpush2.bf16.msra.mxu0 %v4365_v47  ;;  %v919_v47 = vrot.slane %v906_v20, %v4809_v58  ;;  %v4440_v20 = vld [vmem:[#allocation7 + $0x720] ss:$12 sps:$4 sm:$0xff]  }
 0x200   :  { %1996 = vmatprep.subr.bf16.mxu0 %v4370_v48 }
 0x203   :  { %1997 = vmatpush2.bf16.msra.mxu0 %v4368_v49 }
 0x204   :  { %1998 = vmatprep.subr.bf16.mxu0 %v4373_v50  ;;  %v4414_v50 = vld [vmem:[#allocation7 + $0x608] ss:$12 sps:$4 sm:$0xff]  }
 0x207   :  { %1999 = vmatpush2.bf16.msra.mxu0 %v4371_v55 }
 0x208   :  { %2000 = vmatprep.subr.bf16.mxu0 %v4376_v60  ;;  %v4416_v60 = vld [vmem:[#allocation7 + $0x530] ss:$12 sps:$4 sm:$0xff]  }
 0x20b   :  { %2001 = vmatpush2.bf16.msra.mxu0 %v4374_v62  ;;  %v4417_v62 = vld [vmem:[#allocation7 + $0x5d8] ss:$12 sps:$4 sm:$0xff]  }
 0x20c   :  { %2002 = vmatprep.subr.bf16.mxu0 %v4379_v0  ;;  %v4419_v0 = vld [vmem:[#allocation7 + $0x5c0] ss:$12 sps:$4 sm:$0xff]  }
 0x20f   :  { %2003 = vmatpush2.bf16.msra.mxu0 %v4377_v3  ;;  %v4421_v3 = vld [vmem:[#allocation7 + $0x5a8] ss:$12 sps:$4 sm:$0xff]  }
 0x210   :  { %2004 = vmatprep.subr.bf16.mxu0 %v4382_v5  ;;  %v4423_v5 = vld [vmem:[#allocation7 + $0x590] ss:$12 sps:$4 sm:$0xff]  }
 0x213   :  { %2005 = vmatpush2.bf16.msra.mxu0 %v4380_v7  ;;  %v4425_v7 = vld [vmem:[#allocation7 + $0x578] ss:$12 sps:$4 sm:$0xff]  }
 0x214   :  { %4070 = vmatprep.subr.bf16.mxu0 %v4739_v52 }
 0x256   :  { %v1341_v16 = vpop.f32.mrf.mxu1 }
 0x257   :  { %v1342_v23 = vadd.f32 %v1341_v16, %v911_v21  ;;  %v4434_v16 = vld [vmem:[#allocation7 + $0x750] ss:$12 sps:$4 sm:$0xff]   ;;  %v4445_v21 = vld [vmem:[#allocation7 + $0x70c] ss:$12 sps:$4 sm:$0xff]  }
 0x258   :  { %v1343_v17 = vpop.f32.mrf.mxu1 }
 0x259   :  { %v1344_v26 = vadd.f32 %v1343_v17, %v915_v22  ;;  %v4439_v17 = vld [vmem:[#allocation7 + $0x73c] ss:$12 sps:$4 sm:$0xff]  }
 0x25a   :  { %v1345_v18 = vpop.f32.mrf.mxu1  ;;  %v4443_v22 = vld [vmem:[#allocation7 + $0x708] ss:$12 sps:$4 sm:$0xff]  }
 0x25b   :  { %v4437_v18 = vld [vmem:[#allocation7 + $0x738] ss:$12 sps:$4 sm:$0xff]  }
 0x25c   :  { %v1346_v19 = vpop.f32.mrf.mxu1 }
 0x25d   :  { %v4442_v19 = vld [vmem:[#allocation7 + $0x724] ss:$12 sps:$4 sm:$0xff]  }
 0x276   :  { %v1382_v24 = vpop.f32.mrf.mxu0  ;;  %v1463_v25 = vpop.f32.mrf.mxu1 }
 0x277   :  { %v1383_v27 = vadd.f32 %v1382_v24, %v1342_v23  ;;  %v4448_v23 = vld [vmem:[#allocation7 + $0x6f4] ss:$12 sps:$4 sm:$0xff]   ;;  %v4446_v24 = vld [vmem:[#allocation7 + $0x6f0] ss:$12 sps:$4 sm:$0xff]  }
 0x278   :  { %v1384_v28 = vpop.f32.mrf.mxu0  ;;  %v4068_v29 = vpop.f32.mrf.mxu1 }
 0x279   :  { %v1385_v30 = vadd.f32 %v1384_v28, %v1344_v26  ;;  %v1469_v31 = vmax.f32 %v1383_v27, 0.0  ;;  %v4449_v26 = vld [vmem:[#allocation7 + $0x6d8] ss:$12 sps:$4 sm:$0xff]   ;;  %v4452_v28 = vld [vmem:[#allocation7 + $0x6c0] ss:$12 sps:$4 sm:$0xff]  }
 0x27a   :  { %v1386_v32 = vpop.f32.mrf.mxu0  ;;  %v1466_v33 = vpop.f32.mrf.mxu1  ;;  %v4454_v27 = vld [vmem:[#allocation7 + $0x6c4] ss:$12 sps:$4 sm:$0xff]   ;;  %v4457_v29 = vld [vmem:[#allocation7 + $0x82c] ss:$12 sps:$4 sm:$0xff]  }
 0x27b   :  { %v1470_v34 = vmax.f32 %v1385_v30, 0.0  ;;  %v4852_v39 = vpack.c.bf16 %v1469_v31, %v1469_v31  ;;  %v4455_v30 = vld [vmem:[#allocation7 + $0x828] ss:$12 sps:$4 sm:$0xff]   ;;  %v4458_v32 = vld [vmem:[#allocation7 + $0x810] ss:$12 sps:$4 sm:$0xff]  }
 0x27c   :  { %v1387_v35 = vpop.f32.mrf.mxu0  ;;  %v4069_v36 = vpop.f32.mrf.mxu1  ;;  %v4460_v31 = vld [vmem:[#allocation7 + $0x814] ss:$12 sps:$4 sm:$0xff]   ;;  %v4463_v33 = vld [vmem:[#allocation7 + $0x7fc] ss:$12 sps:$4 sm:$0xff]  }
 0x27d   :  { %v1473_v37 = vpack.c.bf16 %v1470_v34, %v1470_v34  ;;  %v4461_v34 = vld [vmem:[#allocation7 + $0x7f8] ss:$12 sps:$4 sm:$0xff]   ;;  %v4464_v36 = vld [vmem:[#allocation7 + $0x7e0] ss:$12 sps:$4 sm:$0xff]  }
 0x27e   :  { %v4466_v35 = vld [vmem:[#allocation7 + $0x7e4] ss:$12 sps:$4 sm:$0xff]  }
 0x27f   :  { %2006 = vmatprep.mubr.bf16.mxu0 %v1473_v37 }
 0x280   :  { %2007 = vmatmul.mubr.bf16.vlgmr.msra.gmra.mxu0 %v4852_v39 }
 0x281   :  { %4071 = vmatpush3.bf16.msra.mxu0 %v4386_v38  ;;  %4086 = vmatprep.mubr.msk.bf16.mxu0 %vm4740_vm0, %v4739_v52  ;;  %v4479_v38 = vld [vmem:[#allocation7 + $0x8e8] ss:$12 sps:$4 sm:$0xff]  }
 0x282   :  { %4072 = vmatprep.subr.bf16.mxu0 %v4739_v52 }
 0x285   :  { %4073 = vmatpush3.bf16.msra.mxu0 %v4390_v40  ;;  %v4485_v40 = vld [vmem:[#allocation7 + $0x8d4] ss:$12 sps:$4 sm:$0xff]  }
 0x286   :  { %4074 = vmatprep.subr.bf16.mxu0 %v4739_v52 }
 0x289   :  { %4075 = vmatpush3.bf16.msra.mxu0 %v4394_v41  ;;  %v4467_v41 = vld [vmem:[#allocation7 + $0x7c8] ss:$12 sps:$4 sm:$0xff]  }
 0x28a   :  { %4076 = vmatprep.subr.bf16.mxu0 %v4739_v52 }
 0x28d   :  { %4077 = vmatpush3.bf16.msra.mxu0 %v4398_v42  ;;  %v4483_v42 = vld [vmem:[#allocation7 + $0x8d0] ss:$12 sps:$4 sm:$0xff]  }
 0x28e   :  { %4078 = vmatprep.subr.bf16.mxu0 %v4739_v52 }
 0x291   :  { %4079 = vmatpush3.bf16.msra.mxu0 %v4402_v43  ;;  %v4472_v43 = vld [vmem:[#allocation7 + $0x7b4] ss:$12 sps:$4 sm:$0xff]  }
 0x292   :  { %4080 = vmatprep.subr.bf16.mxu0 %v4739_v52 }
 0x295   :  { %4081 = vmatpush3.bf16.msra.mxu0 %v4406_v44  ;;  %v4489_v44 = vld [vmem:[#allocation7 + $0x8bc] ss:$12 sps:$4 sm:$0xff]  }
 0x296   :  { %v3922_v46 = vpop.f32.mrf.mxu0  ;;  %4082 = vmatprep.subr.bf16.mxu0 %v4739_v52 }
 0x298   :  { %v3923_v48 = vpop.f32.mrf.mxu0 }
 0x299   :  { %v3924_v49 = vadd.f32 %v3923_v48, %v3922_v46  ;;  %4083 = vmatpush3.bf16.msra.mxu0 %v4410_v45  ;;  %v4470_v45 = vld [vmem:[#allocation7 + $0x7b0] ss:$12 sps:$4 sm:$0xff]   ;;  %v4487_v46 = vld [vmem:[#allocation7 + $0x8b8] ss:$12 sps:$4 sm:$0xff]  }
 0x29a   :  { %v3925_v51 = vpop.f32.mrf.mxu0  ;;  %4084 = vmatprep.subr.bf16.mxu0 %v4739_v52  ;;  %v4493_v48 = vld [vmem:[#allocation7 + $0x8a4] ss:$12 sps:$4 sm:$0xff]  }
 0x29b   :  { %v1424_v53 = vadd.f32 %v3924_v49, %v919_v47  ;;  %v4475_v47 = vld [vmem:[#allocation7 + $0x79c] ss:$12 sps:$4 sm:$0xff]   ;;  %v4473_v49 = vld [vmem:[#allocation7 + $0x798] ss:$12 sps:$4 sm:$0xff]  }
 0x29c   :  { %v3926_v54 = vpop.f32.mrf.mxu0  ;;  %v4478_v51 = vld [vmem:[#allocation7 + $0x784] ss:$12 sps:$4 sm:$0xff]  }
 0x29d   :  { %v1464_v55 = vadd.f32 %v1463_v25, %v1424_v53  ;;  %4085 = vmatpush3.bf16.msra.mxu0 %v4414_v50  ;;  %v4451_v25 = vld [vmem:[#allocation7 + $0x6dc] ss:$12 sps:$4 sm:$0xff]   ;;  %v4491_v50 = vld [vmem:[#allocation7 + $0x8a0] ss:$12 sps:$4 sm:$0xff]  }
 0x29e   :  { %v4497_v53 = vld [vmem:[#allocation7 + $0x88c] ss:$12 sps:$4 sm:$0xff]  }
 0x29f   :  { %v1471_v59 = vmax.f32 %v1464_v55, 0.0  ;;  %v4476_v54 = vld [vmem:[#allocation7 + $0x780] ss:$12 sps:$4 sm:$0xff]   ;;  %v4495_v55 = vld [vmem:[#allocation7 + $0x888] ss:$12 sps:$4 sm:$0xff]  }
 0x2a1   :  { %v1474_v61 = vpack.c.bf16 %v1471_v59, %v1471_v59  ;;  %v4501_v59 = vld [vmem:[#allocation7 + $0x874] ss:$12 sps:$4 sm:$0xff]  }
 0x2a3   :  { %2048 = vmatmul.mubr.bf16.vlgmr.msra.gmra.mxu1 %v1474_v61  ;;  %4087 = vmatmul.mubr.bf16.vlgmr.msra.gmra.mxu0 %v1474_v61  ;;  %v4505_v61 = vld [vmem:[#allocation7 + $0x85c] ss:$12 sps:$4 sm:$0xff]  }
 0x2a4   :  { %3938 = vmatpush3.bf16.msra.mxu1 %v4416_v60  ;;  %2088 = vmatprep.mubr.bf16.mxu1 %v1473_v37  ;;  %v4469_v37 = vld [vmem:[#allocation7 + $0x7cc] ss:$12 sps:$4 sm:$0xff]   ;;  %v4499_v60 = vld [vmem:[#allocation7 + $0x870] ss:$12 sps:$4 sm:$0xff]  }
 0x2a5   :  { %3939 = vmatprep.subr.bf16.mxu1 %v4417_v62  ;;  %2714 = vmatprep.mubr.bf16.mxu0 %v4738_v1  ;;  %v4503_v62 = vld [vmem:[#allocation7 + $0x858] ss:$12 sps:$4 sm:$0xff]  }
 0x2a8   :  { %3940 = vmatpush3.bf16.msra.mxu1 %v4418_v63  ;;  %v4509_v63 = vld [vmem:[#allocation7 + $0x844] ss:$12 sps:$4 sm:$0xff]  }
 0x2a9   :  { %3941 = vmatprep.subr.bf16.mxu1 %v4419_v0  ;;  %v4507_v0 = vld [vmem:[#allocation7 + $0x840] ss:$12 sps:$4 sm:$0xff]  }
 0x2ac   :  { %3942 = vmatpush3.bf16.msra.mxu1 %v4420_v2  ;;  %v4511_v2 = vld [vmem:[#allocation7 + $0x830] ss:$12 sps:$4 sm:$0xff]  }
 0x2ad   :  { %3943 = vmatprep.subr.bf16.mxu1 %v4421_v3 }
 0x2b0   :  { %3944 = vmatpush3.bf16.msra.mxu1 %v4422_v4 }
 0x2b1   :  { %3945 = vmatprep.subr.bf16.mxu1 %v4423_v5 }
 0x2b4   :  { %3946 = vmatpush3.bf16.msra.mxu1 %v4424_v6 }
 0x2b5   :  { %3947 = vmatprep.subr.bf16.mxu1 %v4425_v7  ;;  %v1573_v7 = vld [vmem:[#allocation8 + $0x6] sm:$0x7] }
 0x2b8   :  { %3948 = vmatpush3.bf16.msra.mxu1 %v4426_v8  ;;  %v1578_v8 = vrot.slane %v1573_v7, %v4805_v56 }
 0x2b9   :  { %3949 = vmatprep.subr.bf16.mxu1 %v4427_v9  ;;  %v1582_v9 = vrot.slane %v1573_v7, %v4807_v57 }
 0x2bc   :  { %3950 = vmatpush3.bf16.msra.mxu1 %v4428_v10 }
 0x2bd   :  { %3951 = vmatprep.subr.bf16.mxu1 %v4429_v11 }
 0x2c0   :  { %3952 = vmatpush3.bf16.msra.mxu1 %v4430_v12 }
 0x2c1   :  { %2641 = vmatprep.subr.bf16.mxu1 %v4433_v13 }
 0x2c3   :  { %2089 = vmatmul.mubr.bf16.vlgmr.msra.gmra.mxu1 %v4852_v39  ;;  %v4481_v39 = vld [vmem:[#allocation7 + $0x8ec] ss:$12 sps:$4 sm:$0xff]  }
 0x2c4   :  { %2642 = vmatpush1.bf16.msra.mxu1 %v4431_v14  ;;  %2682 = vmatprep.subr.bf16.mxu0 %v4481_v39 }
 0x2c5   :  { %2643 = vmatprep.subr.bf16.mxu1 %v4436_v15  ;;  %2683 = vmatpush1.bf16.msra.mxu0 %v4479_v38 }
 0x2c6   :  { %2684 = vmatprep.subr.bf16.mxu0 %v4485_v40 }
 0x2c8   :  { %2644 = vmatpush1.bf16.msra.mxu1 %v4434_v16 }
 0x2c9   :  { %2645 = vmatprep.subr.bf16.mxu1 %v4439_v17  ;;  %2685 = vmatpush1.bf16.msra.mxu0 %v4483_v42 }
 0x2ca   :  { %2686 = vmatprep.subr.bf16.mxu0 %v4489_v44 }
 0x2cc   :  { %2646 = vmatpush1.bf16.msra.mxu1 %v4437_v18 }
 0x2cd   :  { %2647 = vmatprep.subr.bf16.mxu1 %v4442_v19  ;;  %2687 = vmatpush1.bf16.msra.mxu0 %v4487_v46  ;;  %v4514_v46 = vld [vmem:[#allocation7 + $0x758] ss:$12 sps:$4 sm:$0xff]  }
 0x2ce   :  { %2688 = vmatprep.subr.bf16.mxu0 %v4493_v48  ;;  %v4516_v48 = vld [vmem:[#allocation7 + $0x740] ss:$12 sps:$4 sm:$0xff]  }
 0x2d0   :  { %2648 = vmatpush1.bf16.msra.mxu1 %v4440_v20 }
 0x2d1   :  { %2649 = vmatprep.subr.bf16.mxu1 %v4445_v21  ;;  %2689 = vmatpush1.bf16.msra.mxu0 %v4491_v50  ;;  %v4518_v50 = vld [vmem:[#allocation7 + $0x728] ss:$12 sps:$4 sm:$0xff]  }
 0x2d2   :  { %2690 = vmatprep.subr.bf16.mxu0 %v4497_v53  ;;  %v4520_v53 = vld [vmem:[#allocation7 + $0x710] ss:$12 sps:$4 sm:$0xff]  }
 0x2d4   :  { %2650 = vmatpush1.bf16.msra.mxu1 %v4443_v22 }
 0x2d5   :  { %2651 = vmatprep.subr.bf16.mxu1 %v4448_v23  ;;  %2691 = vmatpush1.bf16.msra.mxu0 %v4495_v55  ;;  %v4522_v55 = vld [vmem:[#allocation7 + $0x6f8] ss:$12 sps:$4 sm:$0xff]  }
 0x2d6   :  { %2692 = vmatprep.subr.bf16.mxu0 %v4501_v59  ;;  %v4523_v59 = vld [vmem:[#allocation7 + $0x7a0] ss:$12 sps:$4 sm:$0xff]  }
 0x2d8   :  { %2652 = vmatpush1.bf16.msra.mxu1 %v4446_v24 }
 0x2d9   :  { %2653 = vmatprep.subr.bf16.mxu1 %v4451_v25  ;;  %2693 = vmatpush1.bf16.msra.mxu0 %v4499_v60  ;;  %v4482_v25 = vld [vmem:[#allocation7 + $0x8f0] ss:$12 sps:$4 sm:$0xff]   ;;  %v4524_v60 = vld [vmem:[#allocation7 + $0x6e0] ss:$12 sps:$4 sm:$0xff]  }
 0x2da   :  { %2694 = vmatprep.subr.bf16.mxu0 %v4505_v61  ;;  %v4526_v61 = vld [vmem:[#allocation7 + $0x6c8] ss:$12 sps:$4 sm:$0xff]  }
 0x2dc   :  { %2654 = vmatpush1.bf16.msra.mxu1 %v4449_v26 }
 0x2dd   :  { %2655 = vmatprep.subr.bf16.mxu1 %v4454_v27  ;;  %2695 = vmatpush1.bf16.msra.mxu0 %v4503_v62  ;;  %v4486_v27 = vld [vmem:[#allocation7 + $0x8d8] ss:$12 sps:$4 sm:$0xff]  }
 0x2de   :  { %2696 = vmatprep.subr.bf16.mxu0 %v4509_v63  ;;  %v4529_v62 = vld [vmem:[#allocation7 + $0x9ac] ss:$12 sps:$4 sm:$0xff]   ;;  %v4527_v63 = vld [vmem:[#allocation7 + $0x9a8] ss:$12 sps:$4 sm:$0xff]  }
 0x2e0   :  { %2656 = vmatpush1.bf16.msra.mxu1 %v4452_v28  ;;  %v4490_v28 = vld [vmem:[#allocation7 + $0x8c0] ss:$12 sps:$4 sm:$0xff]  }
 0x2e1   :  { %2657 = vmatprep.subr.bf16.mxu1 %v4457_v29  ;;  %2697 = vmatpush1.bf16.msra.mxu0 %v4507_v0  ;;  %v4494_v29 = vld [vmem:[#allocation7 + $0x8a8] ss:$12 sps:$4 sm:$0xff]  }
 0x2e2   :  { %3968 = vmatprep.subr.bf16.mxu0 %v4511_v2  ;;  %v4532_v0 = vld [vmem:[#allocation7 + $0x994] ss:$12 sps:$4 sm:$0xff]   ;;  %v4530_v2 = vld [vmem:[#allocation7 + $0x990] ss:$12 sps:$4 sm:$0xff]  }
 0x2e4   :  { %2658 = vmatpush2.bf16.msra.mxu1 %v4455_v30  ;;  %v4498_v30 = vld [vmem:[#allocation7 + $0x890] ss:$12 sps:$4 sm:$0xff]  }
 0x2e5   :  { %2659 = vmatprep.subr.bf16.mxu1 %v4460_v31  ;;  %v4502_v31 = vld [vmem:[#allocation7 + $0x878] ss:$12 sps:$4 sm:$0xff]  }
 0x2e8   :  { %2660 = vmatpush2.bf16.msra.mxu1 %v4458_v32  ;;  %v4506_v32 = vld [vmem:[#allocation7 + $0x860] ss:$12 sps:$4 sm:$0xff]  }
 0x2e9   :  { %2661 = vmatprep.subr.bf16.mxu1 %v4463_v33 }
 0x2ec   :  { %2662 = vmatpush2.bf16.msra.mxu1 %v4461_v34  ;;  %v1586_v34 = vrot.slane %v1573_v7, %v4809_v58  ;;  %v4541_v7 = vld [vmem:[#allocation7 + $0x94c] ss:$12 sps:$4 sm:$0xff]  }
 0x2ed   :  { %2663 = vmatprep.subr.bf16.mxu1 %v4466_v35 }
 0x2f0   :  { %2664 = vmatpush2.bf16.msra.mxu1 %v4464_v36 }
 0x2f1   :  { %2665 = vmatprep.subr.bf16.mxu1 %v4469_v37  ;;  %v4510_v37 = vld [vmem:[#allocation7 + $0x848] ss:$12 sps:$4 sm:$0xff]  }
 0x2f4   :  { %2666 = vmatpush2.bf16.msra.mxu1 %v4467_v41 }
 0x2f5   :  { %2667 = vmatprep.subr.bf16.mxu1 %v4472_v43  ;;  %v4512_v43 = vld [vmem:[#allocation7 + $0x770] ss:$12 sps:$4 sm:$0xff]  }
 0x2f8   :  { %2668 = vmatpush2.bf16.msra.mxu1 %v4470_v45  ;;  %v4513_v45 = vld [vmem:[#allocation7 + $0x818] ss:$12 sps:$4 sm:$0xff]  }
 0x2f9   :  { %2669 = vmatprep.subr.bf16.mxu1 %v4475_v47  ;;  %v4515_v47 = vld [vmem:[#allocation7 + $0x800] ss:$12 sps:$4 sm:$0xff]  }
 0x2fc   :  { %2670 = vmatpush2.bf16.msra.mxu1 %v4473_v49  ;;  %v4517_v49 = vld [vmem:[#allocation7 + $0x7e8] ss:$12 sps:$4 sm:$0xff]  }
 0x2fd   :  { %2671 = vmatprep.subr.bf16.mxu1 %v4478_v51  ;;  %v4519_v51 = vld [vmem:[#allocation7 + $0x7d0] ss:$12 sps:$4 sm:$0xff]  }
 0x300   :  { %2672 = vmatpush2.bf16.msra.mxu1 %v4476_v54  ;;  %v4521_v54 = vld [vmem:[#allocation7 + $0x7b8] ss:$12 sps:$4 sm:$0xff]  }
 0x301   :  { %4090 = vmatprep.subr.bf16.mxu1 %v4739_v52 }
 0x340   :  { %v2008_v3 = vpop.f32.mrf.mxu0 }
 0x341   :  { %v2009_v10 = vadd.f32 %v2008_v3, %v1578_v8  ;;  %v4535_v3 = vld [vmem:[#allocation7 + $0x97c] ss:$12 sps:$4 sm:$0xff]  }
 0x342   :  { %v2010_v4 = vpop.f32.mrf.mxu0  ;;  %v4539_v8 = vld [vmem:[#allocation7 + $0x948] ss:$12 sps:$4 sm:$0xff]  }
 0x343   :  { %v2011_v13 = vadd.f32 %v2010_v4, %v1582_v9  ;;  %v4533_v4 = vld [vmem:[#allocation7 + $0x978] ss:$12 sps:$4 sm:$0xff]   ;;  %v4544_v9 = vld [vmem:[#allocation7 + $0x934] ss:$12 sps:$4 sm:$0xff]  }
 0x344   :  { %v2012_v5 = vpop.f32.mrf.mxu0 }
 0x345   :  { %v4538_v5 = vld [vmem:[#allocation7 + $0x964] ss:$12 sps:$4 sm:$0xff]  }
 0x346   :  { %v2013_v6 = vpop.f32.mrf.mxu0 }
 0x347   :  { %v4536_v6 = vld [vmem:[#allocation7 + $0x960] ss:$12 sps:$4 sm:$0xff]  }
 0x363   :  { %v2049_v11 = vpop.f32.mrf.mxu1  ;;  %v2130_v12 = vpop.f32.mrf.mxu0 }
 0x364   :  { %v2050_v14 = vadd.f32 %v2049_v11, %v2009_v10  ;;  %v4542_v10 = vld [vmem:[#allocation7 + $0x930] ss:$12 sps:$4 sm:$0xff]  }
 0x365   :  { %v2051_v15 = vpop.f32.mrf.mxu1  ;;  %v4088_v16 = vpop.f32.mrf.mxu0  ;;  %v4547_v11 = vld [vmem:[#allocation7 + $0x91c] ss:$12 sps:$4 sm:$0xff]  }
 0x366   :  { %v2052_v17 = vadd.f32 %v2051_v15, %v2011_v13  ;;  %v2136_v18 = vmax.f32 %v2050_v14, 0.0  ;;  %v4550_v13 = vld [vmem:[#allocation7 + $0x904] ss:$12 sps:$4 sm:$0xff]   ;;  %v4548_v14 = vld [vmem:[#allocation7 + $0x900] ss:$12 sps:$4 sm:$0xff]  }
 0x367   :  { %v2053_v19 = vpop.f32.mrf.mxu1  ;;  %v2133_v20 = vpop.f32.mrf.mxu0  ;;  %v4553_v15 = vld [vmem:[#allocation7 + $0xa6c] ss:$12 sps:$4 sm:$0xff]   ;;  %v4551_v16 = vld [vmem:[#allocation7 + $0xa68] ss:$12 sps:$4 sm:$0xff]  }
 0x368   :  { %v2137_v21 = vmax.f32 %v2052_v17, 0.0  ;;  %v4870_v26 = vpack.c.bf16 %v2136_v18, %v2136_v18  ;;  %v4556_v17 = vld [vmem:[#allocation7 + $0xa54] ss:$12 sps:$4 sm:$0xff]   ;;  %v4554_v18 = vld [vmem:[#allocation7 + $0xa50] ss:$12 sps:$4 sm:$0xff]  }
 0x369   :  { %v2054_v22 = vpop.f32.mrf.mxu1  ;;  %v4089_v23 = vpop.f32.mrf.mxu0  ;;  %v4559_v19 = vld [vmem:[#allocation7 + $0xa3c] ss:$12 sps:$4 sm:$0xff]   ;;  %v4557_v20 = vld [vmem:[#allocation7 + $0xa38] ss:$12 sps:$4 sm:$0xff]  }
 0x36a   :  { %v2140_v24 = vpack.c.bf16 %v2137_v21, %v2137_v21  ;;  %v4562_v21 = vld [vmem:[#allocation7 + $0xa24] ss:$12 sps:$4 sm:$0xff]   ;;  %v4560_v22 = vld [vmem:[#allocation7 + $0xa20] ss:$12 sps:$4 sm:$0xff]  }
 0x36b   :  { %v4565_v23 = vld [vmem:[#allocation7 + $0xa0c] ss:$12 sps:$4 sm:$0xff]  }
 0x36c   :  { %2673 = vmatprep.mubr.bf16.mxu1 %v2140_v24 }
 0x36d   :  { %2674 = vmatmul.mubr.bf16.vlgmr.msra.gmra.mxu1 %v4870_v26 }
 0x36e   :  { %4091 = vmatpush3.bf16.msra.mxu1 %v4482_v25  ;;  %4106 = vmatprep.mubr.msk.bf16.mxu1 %vm4740_vm0, %v4739_v52  ;;  %v4577_v25 = vld [vmem:[#allocation7 + $0xb2c] ss:$12 sps:$4 sm:$0xff]  }
 0x36f   :  { %4092 = vmatprep.subr.bf16.mxu1 %v4739_v52 }
 0x372   :  { %4093 = vmatpush3.bf16.msra.mxu1 %v4486_v27  ;;  %v4563_v27 = vld [vmem:[#allocation7 + $0xa08] ss:$12 sps:$4 sm:$0xff]  }
 0x373   :  { %4094 = vmatprep.subr.bf16.mxu1 %v4739_v52 }
 0x376   :  { %4095 = vmatpush3.bf16.msra.mxu1 %v4490_v28  ;;  %v4579_v28 = vld [vmem:[#allocation7 + $0xb10] ss:$12 sps:$4 sm:$0xff]  }
 0x377   :  { %4096 = vmatprep.subr.bf16.mxu1 %v4739_v52 }
 0x37a   :  { %4097 = vmatpush3.bf16.msra.mxu1 %v4494_v29  ;;  %v4568_v29 = vld [vmem:[#allocation7 + $0x9f4] ss:$12 sps:$4 sm:$0xff]  }
 0x37b   :  { %4098 = vmatprep.subr.bf16.mxu1 %v4739_v52 }
 0x37e   :  { %4099 = vmatpush3.bf16.msra.mxu1 %v4498_v30  ;;  %v4585_v30 = vld [vmem:[#allocation7 + $0xafc] ss:$12 sps:$4 sm:$0xff]  }
 0x37f   :  { %4100 = vmatprep.subr.bf16.mxu1 %v4739_v52 }
 0x382   :  { %4101 = vmatpush3.bf16.msra.mxu1 %v4502_v31  ;;  %v4566_v31 = vld [vmem:[#allocation7 + $0x9f0] ss:$12 sps:$4 sm:$0xff]  }
 0x383   :  { %v3953_v33 = vpop.f32.mrf.mxu1  ;;  %4102 = vmatprep.subr.bf16.mxu1 %v4739_v52 }
 0x385   :  { %v3954_v35 = vpop.f32.mrf.mxu1 }
 0x386   :  { %v3955_v36 = vadd.f32 %v3954_v35, %v3953_v33  ;;  %4103 = vmatpush3.bf16.msra.mxu1 %v4506_v32  ;;  %v4583_v32 = vld [vmem:[#allocation7 + $0xaf8] ss:$12 sps:$4 sm:$0xff]   ;;  %v4571_v33 = vld [vmem:[#allocation7 + $0x9dc] ss:$12 sps:$4 sm:$0xff]  }
 0x387   :  { %v3956_v38 = vpop.f32.mrf.mxu1  ;;  %4104 = vmatprep.subr.bf16.mxu1 %v4739_v52  ;;  %v4569_v35 = vld [vmem:[#allocation7 + $0x9d8] ss:$12 sps:$4 sm:$0xff]  }
 0x388   :  { %v2091_v39 = vadd.f32 %v3955_v36, %v1586_v34  ;;  %v4589_v34 = vld [vmem:[#allocation7 + $0xae4] ss:$12 sps:$4 sm:$0xff]   ;;  %v4587_v36 = vld [vmem:[#allocation7 + $0xae0] ss:$12 sps:$4 sm:$0xff]  }
 0x389   :  { %v3957_v40 = vpop.f32.mrf.mxu1  ;;  %v4593_v38 = vld [vmem:[#allocation7 + $0xacc] ss:$12 sps:$4 sm:$0xff]  }
 0x38a   :  { %v2131_v41 = vadd.f32 %v2130_v12, %v2091_v39  ;;  %4105 = vmatpush3.bf16.msra.mxu1 %v4510_v37  ;;  %v4545_v12 = vld [vmem:[#allocation7 + $0x918] ss:$12 sps:$4 sm:$0xff]   ;;  %v4572_v39 = vld [vmem:[#allocation7 + $0x9c0] ss:$12 sps:$4 sm:$0xff]   ;;  %v4591_v40 = vld [vmem:[#allocation7 + $0xac8] ss:$12 sps:$4 sm:$0xff]  }
 0x38b   :  { %3349 = vmatprep.subr.bf16.mxu1 %v4577_v25  ;;  %v4574_v37 = vld [vmem:[#allocation7 + $0x9c4] ss:$12 sps:$4 sm:$0xff]  }
 0x38c   :  { %v2138_v42 = vmax.f32 %v2131_v41, 0.0  ;;  %v4597_v41 = vld [vmem:[#allocation7 + $0xab4] ss:$12 sps:$4 sm:$0xff]  }
 0x38e   :  { %v2141_v44 = vpack.c.bf16 %v2138_v42, %v2138_v42  ;;  %v4595_v42 = vld [vmem:[#allocation7 + $0xab0] ss:$12 sps:$4 sm:$0xff]  }
 0x390   :  { %2715 = vmatmul.mubr.bf16.vlgmr.msra.gmra.mxu0 %v2141_v44  ;;  %4107 = vmatmul.mubr.bf16.vlgmr.msra.gmra.mxu1 %v2141_v44  ;;  %v4599_v44 = vld [vmem:[#allocation7 + $0xa98] ss:$12 sps:$4 sm:$0xff]  }
 0x391   :  { %3969 = vmatpush3.bf16.msra.mxu0 %v4512_v43  ;;  %2755 = vmatprep.mubr.bf16.mxu0 %v2140_v24  ;;  %v4575_v24 = vld [vmem:[#allocation7 + $0xb28] ss:$12 sps:$4 sm:$0xff]  }
 0x392   :  { %3970 = vmatprep.subr.bf16.mxu0 %v4513_v45  ;;  %3381 = vmatprep.mubr.bf16.mxu1 %v4738_v1  ;;  %v4525_v1 = vld [vmem:[#allocation7 + $0x788] ss:$12 sps:$4 sm:$0xff]   ;;  %v4605_v45 = vld [vmem:[#allocation7 + $0xa84] ss:$12 sps:$4 sm:$0xff]  }
 0x393   :  { %3350 = vmatpush1.bf16.msra.mxu1 %v4575_v24  ;;  %v4601_v43 = vld [vmem:[#allocation7 + $0xa9c] ss:$12 sps:$4 sm:$0xff]  }
 0x395   :  { %3971 = vmatpush3.bf16.msra.mxu0 %v4514_v46  ;;  %v4603_v46 = vld [vmem:[#allocation7 + $0xa80] ss:$12 sps:$4 sm:$0xff]  }
 0x396   :  { %3972 = vmatprep.subr.bf16.mxu0 %v4515_v47  ;;  %v4607_v47 = vld [vmem:[#allocation7 + $0xa70] ss:$12 sps:$4 sm:$0xff]  }
 0x399   :  { %3973 = vmatpush3.bf16.msra.mxu0 %v4516_v48 }
 0x39a   :  { %3974 = vmatprep.subr.bf16.mxu0 %v4517_v49 }
 0x39d   :  { %3975 = vmatpush3.bf16.msra.mxu0 %v4518_v50 }
 0x39e   :  { %3976 = vmatprep.subr.bf16.mxu0 %v4519_v51 }
 0x3a1   :  { %3977 = vmatpush3.bf16.msra.mxu0 %v4520_v53  ;;  %v2240_v53 = vld [vmem:[#allocation8 + $0x9] sm:$0x7] }
 0x3a2   :  { %3978 = vmatprep.subr.bf16.mxu0 %v4521_v54  ;;  %v2245_v54 = vrot.slane %v2240_v53, %v4805_v56 }
 0x3a5   :  { %3979 = vmatpush3.bf16.msra.mxu0 %v4522_v55  ;;  %v2249_v55 = vrot.slane %v2240_v53, %v4807_v57 }
 0x3a6   :  { %3980 = vmatprep.subr.bf16.mxu0 %v4523_v59 }
 0x3a9   :  { %3981 = vmatpush3.bf16.msra.mxu0 %v4524_v60 }
 0x3aa   :  { %3982 = vmatprep.subr.bf16.mxu0 %v4525_v1 }
 0x3ad   :  { %3983 = vmatpush3.bf16.msra.mxu0 %v4526_v61 }
 0x3ae   :  { %3308 = vmatprep.subr.bf16.mxu0 %v4529_v62 }
 0x3b0   :  { %2756 = vmatmul.mubr.bf16.vlgmr.msra.gmra.mxu0 %v4870_v26  ;;  %v4581_v26 = vld [vmem:[#allocation7 + $0xb14] ss:$12 sps:$4 sm:$0xff]  }
 0x3b1   :  { %3309 = vmatpush1.bf16.msra.mxu0 %v4527_v63  ;;  %3351 = vmatprep.subr.bf16.mxu1 %v4581_v26 }
 0x3b2   :  { %3310 = vmatprep.subr.bf16.mxu0 %v4532_v0  ;;  %3352 = vmatpush1.bf16.msra.mxu1 %v4579_v28  ;;  %v4608_v28 = vld [vmem:[#allocation7 + $0x9b0] ss:$12 sps:$4 sm:$0xff]  }
 0x3b3   :  { %3353 = vmatprep.subr.bf16.mxu1 %v4585_v30  ;;  %v4609_v30 = vld [vmem:[#allocation7 + $0xa58] ss:$12 sps:$4 sm:$0xff]  }
 0x3b5   :  { %3311 = vmatpush1.bf16.msra.mxu0 %v4530_v2 }
 0x3b6   :  { %3312 = vmatprep.subr.bf16.mxu0 %v4535_v3  ;;  %3354 = vmatpush1.bf16.msra.mxu1 %v4583_v32  ;;  %v4611_v32 = vld [vmem:[#allocation7 + $0xa40] ss:$12 sps:$4 sm:$0xff]  }
 0x3b7   :  { %3355 = vmatprep.subr.bf16.mxu1 %v4589_v34  ;;  %v4613_v34 = vld [vmem:[#allocation7 + $0xa28] ss:$12 sps:$4 sm:$0xff]  }
 0x3b9   :  { %3313 = vmatpush1.bf16.msra.mxu0 %v4533_v4 }
 0x3ba   :  { %3314 = vmatprep.subr.bf16.mxu0 %v4538_v5  ;;  %3356 = vmatpush1.bf16.msra.mxu1 %v4587_v36  ;;  %v4616_v36 = vld [vmem:[#allocation7 + $0x950] ss:$12 sps:$4 sm:$0xff]  }
 0x3bb   :  { %3357 = vmatprep.subr.bf16.mxu1 %v4593_v38  ;;  %v4618_v38 = vld [vmem:[#allocation7 + $0x938] ss:$12 sps:$4 sm:$0xff]  }
 0x3bd   :  { %3315 = vmatpush1.bf16.msra.mxu0 %v4536_v6 }
 0x3be   :  { %3316 = vmatprep.subr.bf16.mxu0 %v4541_v7  ;;  %3358 = vmatpush1.bf16.msra.mxu1 %v4591_v40  ;;  %v4620_v40 = vld [vmem:[#allocation7 + $0x920] ss:$12 sps:$4 sm:$0xff]  }
 0x3bf   :  { %3359 = vmatprep.subr.bf16.mxu1 %v4597_v41  ;;  %v4621_v41 = vld [vmem:[#allocation7 + $0x9c8] ss:$12 sps:$4 sm:$0xff]  }
 0x3c1   :  { %3317 = vmatpush1.bf16.msra.mxu0 %v4539_v8 }
 0x3c2   :  { %3318 = vmatprep.subr.bf16.mxu0 %v4544_v9  ;;  %3360 = vmatpush1.bf16.msra.mxu1 %v4595_v42  ;;  %v4622_v42 = vld [vmem:[#allocation7 + $0x908] ss:$12 sps:$4 sm:$0xff]  }
 0x3c3   :  { %3361 = vmatprep.subr.bf16.mxu1 %v4601_v43 }
 0x3c5   :  { %3319 = vmatpush1.bf16.msra.mxu0 %v4542_v10  ;;  %v4578_v10 = vld [vmem:[#allocation7 + $0xb30] ss:$12 sps:$4 sm:$0xff]  }
 0x3c6   :  { %3320 = vmatprep.subr.bf16.mxu0 %v4547_v11  ;;  %3362 = vmatpush1.bf16.msra.mxu1 %v4599_v44 }
 0x3c7   :  { %3363 = vmatprep.subr.bf16.mxu1 %v4605_v45 }
 0x3c9   :  { %3321 = vmatpush1.bf16.msra.mxu0 %v4545_v12  ;;  %v4582_v12 = vld [vmem:[#allocation7 + $0xb18] ss:$12 sps:$4 sm:$0xff]  }
 0x3ca   :  { %3322 = vmatprep.subr.bf16.mxu0 %v4550_v13  ;;  %3364 = vmatpush1.bf16.msra.mxu1 %v4603_v46  ;;  %v4586_v13 = vld [vmem:[#allocation7 + $0xb00] ss:$12 sps:$4 sm:$0xff]  }
 0x3cb   :  { %3999 = vmatprep.subr.bf16.mxu1 %v4607_v47  ;;  %v2907_v47 = vld [vmem:[#allocation8 + $0xc] sm:$0x7] }
 0x3cd   :  { %3323 = vmatpush1.bf16.msra.mxu0 %v4548_v14  ;;  %v4590_v14 = vld [vmem:[#allocation7 + $0xae8] ss:$12 sps:$4 sm:$0xff]  }
 0x3ce   :  { %3324 = vmatprep.subr.bf16.mxu0 %v4553_v15  ;;  %v4594_v15 = vld [vmem:[#allocation7 + $0xad0] ss:$12 sps:$4 sm:$0xff]  }
 0x3d1   :  { %3325 = vmatpush2.bf16.msra.mxu0 %v4551_v16  ;;  %v4598_v16 = vld [vmem:[#allocation7 + $0xab8] ss:$12 sps:$4 sm:$0xff]  }
 0x3d2   :  { %3326 = vmatprep.subr.bf16.mxu0 %v4556_v17  ;;  %v4602_v17 = vld [vmem:[#allocation7 + $0xaa0] ss:$12 sps:$4 sm:$0xff]  }
 0x3d5   :  { %3327 = vmatpush2.bf16.msra.mxu0 %v4554_v18 }
 0x3d6   :  { %3328 = vmatprep.subr.bf16.mxu0 %v4559_v19  ;;  %v2253_v19 = vrot.slane %v2240_v53, %v4809_v58  ;;  %v3473_v53 = vld [vmem:[#allocation10] sm:$0x7] }
 0x3d9   :  { %3329 = vmatpush2.bf16.msra.mxu0 %v4557_v20 }
 0x3da   :  { %3330 = vmatprep.subr.bf16.mxu0 %v4562_v21 }
 0x3dd   :  { %3331 = vmatpush2.bf16.msra.mxu0 %v4560_v22  ;;  %v4606_v22 = vld [vmem:[#allocation7 + $0xa88] ss:$12 sps:$4 sm:$0xff]  }
 0x3de   :  { %3332 = vmatprep.subr.bf16.mxu0 %v4565_v23 }
 0x3e1   :  { %3333 = vmatpush2.bf16.msra.mxu0 %v4563_v27 }
 0x3e2   :  { %3334 = vmatprep.subr.bf16.mxu0 %v4568_v29 }
 0x3e5   :  { %3335 = vmatpush2.bf16.msra.mxu0 %v4566_v31  ;;  %v4610_v31 = vld [vmem:[#allocation7 + $0x998] ss:$12 sps:$4 sm:$0xff]  }
 0x3e6   :  { %3336 = vmatprep.subr.bf16.mxu0 %v4571_v33  ;;  %v4612_v33 = vld [vmem:[#allocation7 + $0x980] ss:$12 sps:$4 sm:$0xff]  }
 0x3e9   :  { %3337 = vmatpush2.bf16.msra.mxu0 %v4569_v35  ;;  %v4615_v35 = vld [vmem:[#allocation7 + $0xa10] ss:$12 sps:$4 sm:$0xff]  }
 0x3ea   :  { %3338 = vmatprep.subr.bf16.mxu0 %v4574_v37  ;;  %v4617_v37 = vld [vmem:[#allocation7 + $0x9f8] ss:$12 sps:$4 sm:$0xff]  }
 0x3ed   :  { %3339 = vmatpush2.bf16.msra.mxu0 %v4572_v39  ;;  %v4619_v39 = vld [vmem:[#allocation7 + $0x9e0] ss:$12 sps:$4 sm:$0xff]  }
 0x3ee   :  { %4110 = vmatprep.subr.bf16.mxu0 %v4739_v52 }
 0x42d   :  { %v2675_v48 = vpop.f32.mrf.mxu1 }
 0x42e   :  { %v2676_v59 = vadd.f32 %v2675_v48, %v2245_v54  ;;  %v2912_v48 = vrot.slane %v2907_v47, %v4805_v56 }
 0x42f   :  { %v2677_v49 = vpop.f32.mrf.mxu1 }
 0x430   :  { %v2678_v61 = vadd.f32 %v2677_v49, %v2249_v55  ;;  %v2916_v49 = vrot.slane %v2907_v47, %v4807_v57 }
 0x431   :  { %v2679_v50 = vpop.f32.mrf.mxu1 }
 0x433   :  { %v2680_v51 = vpop.f32.mrf.mxu1 }
 0x450   :  { %v2716_v60 = vpop.f32.mrf.mxu0  ;;  %v2797_v1 = vpop.f32.mrf.mxu1 }
 0x451   :  { %v2717_v62 = vadd.f32 %v2716_v60, %v2676_v59 }
 0x452   :  { %v2718_v63 = vpop.f32.mrf.mxu0  ;;  %v4108_v0 = vpop.f32.mrf.mxu1 }
 0x453   :  { %v2719_v2 = vadd.f32 %v2718_v63, %v2678_v61  ;;  %v2803_v3 = vmax.f32 %v2717_v62, 0.0  ;;  %v3478_v62 = vrot.slane %v3473_v53, %v4805_v56  ;;  %v3482_v0 = vrot.slane %v3473_v53, %v4807_v57 }
 0x454   :  { %v2720_v4 = vpop.f32.mrf.mxu0  ;;  %v2800_v5 = vpop.f32.mrf.mxu1 }
 0x455   :  { %v2804_v6 = vmax.f32 %v2719_v2, 0.0  ;;  %v4888_v11 = vpack.c.bf16 %v2803_v3, %v2803_v3 }
 0x456   :  { %v2721_v7 = vpop.f32.mrf.mxu0  ;;  %v4109_v8 = vpop.f32.mrf.mxu1 }
 0x457   :  { %v2807_v9 = vpack.c.bf16 %v2804_v6, %v2804_v6 }
 0x459   :  { %3340 = vmatprep.mubr.bf16.mxu0 %v2807_v9 }
 0x45a   :  { %3341 = vmatmul.mubr.bf16.vlgmr.msra.gmra.mxu0 %v4888_v11 }
 0x45b   :  { %4111 = vmatpush3.bf16.msra.mxu0 %v4578_v10  ;;  %4126 = vmatprep.mubr.msk.bf16.mxu0 %vm4740_vm0, %v4739_v52 }
 0x45c   :  { %4112 = vmatprep.subr.bf16.mxu0 %v4739_v52 }
 0x45f   :  { %4113 = vmatpush3.bf16.msra.mxu0 %v4582_v12 }
 0x460   :  { %4114 = vmatprep.subr.bf16.mxu0 %v4739_v52 }
 0x463   :  { %4115 = vmatpush3.bf16.msra.mxu0 %v4586_v13 }
 0x464   :  { %4116 = vmatprep.subr.bf16.mxu0 %v4739_v52 }
 0x467   :  { %4117 = vmatpush3.bf16.msra.mxu0 %v4590_v14 }
 0x468   :  { %4118 = vmatprep.subr.bf16.mxu0 %v4739_v52 }
 0x46b   :  { %4119 = vmatpush3.bf16.msra.mxu0 %v4594_v15 }
 0x46c   :  { %4120 = vmatprep.subr.bf16.mxu0 %v4739_v52 }
 0x46f   :  { %4121 = vmatpush3.bf16.msra.mxu0 %v4598_v16 }
 0x470   :  { %v3984_v18 = vpop.f32.mrf.mxu0  ;;  %4122 = vmatprep.subr.bf16.mxu0 %v4739_v52 }
 0x472   :  { %v3985_v20 = vpop.f32.mrf.mxu0 }
 0x473   :  { %v3986_v21 = vadd.f32 %v3985_v20, %v3984_v18  ;;  %4123 = vmatpush3.bf16.msra.mxu0 %v4602_v17  ;;  %v3486_v17 = vrot.slane %v3473_v53, %v4809_v58  ;;  %v3874_v20 = vld [vmem:[#allocation2] ss:$0 sm:$0xff] }
 0x474   :  { %v3987_v23 = vpop.f32.mrf.mxu0  ;;  %4124 = vmatprep.subr.bf16.mxu0 %v4739_v52  ;;  %v4614_v52 = vld [vmem:[#allocation7 + $0x968] ss:$12 sps:$4 sm:$0xff]  }
 0x475   :  { %v2758_v24 = vadd.f32 %v3986_v21, %v2253_v19 }
 0x476   :  { %v3988_v25 = vpop.f32.mrf.mxu0 }
 0x477   :  { %v2798_v26 = vadd.f32 %v2797_v1, %v2758_v24  ;;  %4125 = vmatpush3.bf16.msra.mxu0 %v4606_v22 }
 0x479   :  { %v2805_v27 = vmax.f32 %v2798_v26, 0.0 }
 0x47b   :  { %v2808_v29 = vpack.c.bf16 %v2805_v27, %v2805_v27 }
 0x47d   :  { %3382 = vmatmul.mubr.bf16.vlgmr.msra.gmra.mxu1 %v2808_v29  ;;  %4127 = vmatmul.mubr.bf16.vlgmr.msra.gmra.mxu0 %v2808_v29 }
 0x47e   :  { %4000 = vmatpush3.bf16.msra.mxu1 %v4608_v28  ;;  %3422 = vmatprep.mubr.bf16.mxu1 %v2807_v9 }
 0x47f   :  { %4001 = vmatprep.subr.bf16.mxu1 %v4609_v30 }
 0x482   :  { %4002 = vmatpush3.bf16.msra.mxu1 %v4610_v31 }
 0x483   :  { %4003 = vmatprep.subr.bf16.mxu1 %v4611_v32 }
 0x486   :  { %4004 = vmatpush3.bf16.msra.mxu1 %v4612_v33 }
 0x487   :  { %4005 = vmatprep.subr.bf16.mxu1 %v4613_v34 }
 0x48a   :  { %4006 = vmatpush3.bf16.msra.mxu1 %v4614_v52 }
 0x48b   :  { %4007 = vmatprep.subr.bf16.mxu1 %v4615_v35 }
 0x48e   :  { %4008 = vmatpush3.bf16.msra.mxu1 %v4616_v36 }
 0x48f   :  { %4009 = vmatprep.subr.bf16.mxu1 %v4617_v37 }
 0x492   :  { %4010 = vmatpush3.bf16.msra.mxu1 %v4618_v38 }
 0x493   :  { %4011 = vmatprep.subr.bf16.mxu1 %v4619_v39 }
 0x496   :  { %4012 = vmatpush3.bf16.msra.mxu1 %v4620_v40 }
 0x497   :  { %4013 = vmatprep.subr.bf16.mxu1 %v4621_v41 }
 0x49a   :  { %4014 = vmatpush3.bf16.msra.mxu1 %v4622_v42 }
 0x49d   :  { %3423 = vmatmul.mubr.bf16.vlgmr.msra.gmra.mxu1 %v4888_v11  ;;  %v2920_v11 = vrot.slane %v2907_v47, %v4809_v58 }
 0x51a   :  { %v3342_v43 = vpop.f32.mrf.mxu0 }
 0x51b   :  { %v3343_v50 = vadd.f32 %v3342_v43, %v2912_v48 }
 0x51c   :  { %v3344_v44 = vpop.f32.mrf.mxu0 }
 0x51d   :  { %v3345_v55 = vadd.f32 %v3344_v44, %v2916_v49 }
 0x51e   :  { %v3346_v45 = vpop.f32.mrf.mxu0 }
 0x520   :  { %v3347_v46 = vpop.f32.mrf.mxu0 }
 0x53d   :  { %v3383_v51 = vpop.f32.mrf.mxu1  ;;  %v3464_v54 = vpop.f32.mrf.mxu0 }
 0x53e   :  { %v3384_v59 = vadd.f32 %v3383_v51, %v3343_v50 }
 0x53f   :  { %v3385_v60 = vpop.f32.mrf.mxu1  ;;  %v4128_v1 = vpop.f32.mrf.mxu0 }
 0x540   :  { %v3470_v61 = vmax.f32 %v3384_v59, 0.0  ;;  %v3386_v63 = vadd.f32 %v3385_v60, %v3345_v55 }
 0x541   :  { %v3387_v2 = vpop.f32.mrf.mxu1  ;;  %v3467_v3 = vpop.f32.mrf.mxu0 }
 0x542   :  { %v3471_v4 = vmax.f32 %v3386_v63, 0.0  ;;  %v3490_v7 = vmul.f32 %v3478_v62, %v3470_v61 }
 0x543   :  { %v3388_v5 = vpop.f32.mrf.mxu1  ;;  %v4129_v6 = vpop.f32.mrf.mxu0 }
 0x544   :  { %v3491_v8 = vmul.f32 %v3482_v0, %v3471_v4 }
 0x546   :  { %v3493_v9 = vadd.f32 %v3491_v8, %v3490_v7 }
 0x55d   :  { %v4015_v10 = vpop.f32.mrf.mxu1 }
 0x55f   :  { %v4016_v12 = vpop.f32.mrf.mxu1 }
 0x560   :  { %v4017_v13 = vadd.f32 %v4016_v12, %v4015_v10 }
 0x561   :  { %v4018_v14 = vpop.f32.mrf.mxu1 }
 0x562   :  { %v3425_v15 = vadd.f32 %v4017_v13, %v2920_v11 }
 0x563   :  { %v4019_v16 = vpop.f32.mrf.mxu1 }
 0x564   :  { %v3465_v56 = vadd.f32 %v3464_v54, %v3425_v15 }
 0x566   :  { %v3472_v57 = vmax.f32 %v3465_v56, 0.0 }
 0x568   :  { %v3492_v18 = vmul.f32 %v3486_v17, %v3472_v57 }
 0x56a   :  { %v3494_v19 = vadd.f32 %v3493_v9, %v3492_v18 }
 0x56c   :  { %3495 = vadd.xlane.f32.xlu0 %v3494_v19 }
 0x5f5   :  { %v3496_v21 = vpop.xlane.xlu0 %3495 }
 0x5f6   :  { %v3504_v22 = vadd.f32 %v3874_v20, %v3496_v21 }
 0x5f8   :  { %3506 = vst.msk [vmem:[%s4918_s7] sm:$0xff] %vm3505_vm1, %v3504_v22 }
 0x5f9   :  { %3511 = vsyncpa [#allocation4], 1 }
 0x5fa   :  { %3512 = vsyncpa [#allocation6], 1 }
 0x5fb   :  { %3513 = vsyncpa [#allocation9], 1 }

</bundles_post_ra>
